<compile_context>
chip_gen: v7x
topology: tpu7x:2x2x1
jax: 0.10.0
libtpu: 0.0.40
codegen_flags: <defaults>
</compile_context>

<pallas_src>
import functools
import math

import jax
import jax.numpy as jnp
from jax.experimental import pallas as pl
from jax.experimental.pallas import tpu as pltpu


MXU_DTYPE = jnp.bfloat16          # matmul inputs; accumulation is f32 on the MXU
LANES = 128                       # pad C_out to a full lane width -> lane-dense stores
FUSED_RESIDENT_BYTES_LIMIT = 12 * 1024 * 1024   # conservative (v7x: 64 MiB physical VMEM)
VMEM_LIMIT_BYTES = 32 * 1024 * 1024


def _round_up(x, m):
    return (x + m - 1) // m * m


def _pick_tile_m(m):
    # Prefer the largest tile that divides M (per-grid-step overhead ~0.35us; HBM
    # roofline fraction rises sharply up to 512-1024 row tiles).
    for cand in (1024, 512, 256, 128, 64, 32, 16, 8):
        if m % cand == 0:
            return cand
    return 512  # pad M up to a multiple of 512


# ------------------------------------------------------------------ fused kernel
# conv-as-matmul + bias, VMEM-resident output, epilogue BatchNorm(batch stats) + ReLU.

def _fused_conv_bn_relu_kernel(p_ref, w_ref, b_ref, g_ref, bt_ref,
                               o_ref, sum_ref, sq_ref, *, tm, gm, m_real, eps):
    i = pl.program_id(0)

    @pl.when(i == 0)
    def _init():
        sum_ref[...] = jnp.zeros_like(sum_ref)
        sq_ref[...] = jnp.zeros_like(sq_ref)

    # conv tile: (tm, K) @ (K, C_pad) on the MXU (bf16 in, f32 accumulate), + bias.
    z = jnp.dot(p_ref[...], w_ref[...], preferred_element_type=jnp.float32) + b_ref[...]

    row0 = pl.multiple_of(i * tm, tm)
    o_ref[pl.ds(row0, tm), :] = z                       # stays resident in VMEM

    # Bias-centred batch statistics: zero-padded patch rows give z == bias -> d == 0,
    # so they contribute nothing and no padding correction is needed.
    d = z - b_ref[...]
    sum_ref[...] += jnp.sum(d, axis=0, keepdims=True)
    sq_ref[...] += jnp.sum(d * d, axis=0, keepdims=True)

    @pl.when(i == gm - 1)
    def _finalize():
        inv_m = 1.0 / m_real
        mean_c = sum_ref[...] * inv_m
        var = jnp.maximum(sq_ref[...] * inv_m - mean_c * mean_c, 0.0)
        scale = g_ref[...] * jax.lax.rsqrt(var + eps)
        shift = bt_ref[...] - (b_ref[...] + mean_c) * scale

        # In-place normalize + ReLU over the resident conv output, one row tile at a time
        # (keeps codegen bounded when gm is large); written back to HBM exactly once.
        @pl.loop(0, gm)
        def _normalize(t):
            r0 = pl.multiple_of(t * tm, tm)
            blk = o_ref[pl.ds(r0, tm), :]
            o_ref[pl.ds(r0, tm), :] = jnp.maximum(blk * scale + shift, 0.0)


def _fused_conv_bn_relu(patches, w_flat, bias, gamma, beta, *, m_real, tm, eps):
    m_pad, K = patches.shape
    c_pad = w_flat.shape[1]
    gm = m_pad // tm

    kernel = functools.partial(_fused_conv_bn_relu_kernel,
                               tm=tm, gm=gm, m_real=float(m_real), eps=float(eps))

    return pl.pallas_call(
        kernel,
        out_shape=jax.ShapeDtypeStruct((m_pad, c_pad), jnp.float32),
        grid=(gm,),
        in_specs=[
            pl.BlockSpec((tm, K), lambda i: (i, 0)),          # patches row tile
            pl.BlockSpec((K, c_pad), lambda i: (0, 0)),       # flattened weights
            pl.BlockSpec((1, c_pad), lambda i: (0, 0)),       # conv bias
            pl.BlockSpec((1, c_pad), lambda i: (0, 0)),       # bn gamma
            pl.BlockSpec((1, c_pad), lambda i: (0, 0)),       # bn beta
        ],
        # Constant block index -> whole conv output is VMEM-resident across the grid and
        # is written to HBM once, after the in-place BN + ReLU.
        out_specs=pl.BlockSpec((m_pad, c_pad), lambda i: (0, 0)),
        scratch_shapes=[pltpu.VMEM((1, c_pad), jnp.float32),   # running channel sum
                        pltpu.VMEM((1, c_pad), jnp.float32)],  # running channel sum-sq
        compiler_params=pltpu.CompilerParams(
            dimension_semantics=("arbitrary",),   # serial: stats + resident output
            vmem_limit_bytes=VMEM_LIMIT_BYTES),
    )(patches, w_flat, bias, gamma, beta)


# ------------------------------------------------------------------ fallback (two-pass)
# Used when the resident conv output would not fit the VMEM budget.

def _conv_stats_kernel(p_ref, w_ref, b_ref, z_ref, ps_ref, pss_ref):
    z = jnp.dot(p_ref[...], w_ref[...], preferred_element_type=jnp.float32) + b_ref[...]
    z_ref[...] = z.astype(z_ref.dtype)        # bf16 intermediate -> half the HBM bytes
    d = z - b_ref[...]
    ps_ref[...] = jnp.sum(d, axis=0, keepdims=True)
    pss_ref[...] = jnp.sum(d * d, axis=0, keepdims=True)


def _bn_relu_kernel(z_ref, s_ref, t_ref, o_ref):
    y = z_ref[...].astype(jnp.float32) * s_ref[...] + t_ref[...]
    o_ref[...] = jnp.maximum(y, 0.0)


def _two_pass_conv_bn_relu(patches, w_flat, bias, gamma, beta, *, m_real, tm, eps):
    m_pad, K = patches.shape
    c_pad = w_flat.shape[1]
    gm = m_pad // tm

    z, psum, psumsq = pl.pallas_call(
        _conv_stats_kernel,
        out_shape=(jax.ShapeDtypeStruct((m_pad, c_pad), jnp.bfloat16),
                   jax.ShapeDtypeStruct((gm, c_pad), jnp.float32),
                   jax.ShapeDtypeStruct((gm, c_pad), jnp.float32)),
        grid=(gm,),
        in_specs=[
            pl.BlockSpec((tm, K), lambda i: (i, 0)),
            pl.BlockSpec((K, c_pad), lambda i: (0, 0)),
            pl.BlockSpec((1, c_pad), lambda i: (0, 0)),
        ],
        out_specs=(
            pl.BlockSpec((tm, c_pad), lambda i: (i, 0)),
            pl.BlockSpec((1, c_pad), lambda i: (i, 0)),
            pl.BlockSpec((1, c_pad), lambda i: (i, 0)),
        ),
        compiler_params=pltpu.CompilerParams(
            dimension_semantics=("parallel",),
            vmem_limit_bytes=VMEM_LIMIT_BYTES),
    )(patches, w_flat, bias)

    inv_m = 1.0 / float(m_real)
    mean_c = jnp.sum(psum, axis=0) * inv_m
    var = jnp.maximum(jnp.sum(psumsq, axis=0) * inv_m - mean_c * mean_c, 0.0)
    scale = gamma[0] * jax.lax.rsqrt(var + eps)
    shift = beta[0] - (bias[0] + mean_c) * scale

    return pl.pallas_call(
        _bn_relu_kernel,
        out_shape=jax.ShapeDtypeStruct((m_pad, c_pad), jnp.float32),
        grid=(gm,),
        in_specs=[
            pl.BlockSpec((tm, c_pad), lambda i: (i, 0)),
            pl.BlockSpec((1, c_pad), lambda i: (0, 0)),
            pl.BlockSpec((1, c_pad), lambda i: (0, 0)),
        ],
        out_specs=pl.BlockSpec((tm, c_pad), lambda i: (i, 0)),
        compiler_params=pltpu.CompilerParams(
            dimension_semantics=("parallel",),
            vmem_limit_bytes=VMEM_LIMIT_BYTES),
    )(z, scale.reshape(1, c_pad), shift.reshape(1, c_pad))


# ------------------------------------------------------------------ forward

def first_conv_forward(x, params, *, eps=1e-5):
    """x: (N, C_in, H, W) f32 -> (N, H*W, C_out) f32  (== FirstConv.forward)."""
    w, b = params["conv_w"], params["conv_b"]
    gamma, beta = params["bn_w"], params["bn_b"]
    N, C_in, H, W = x.shape
    C_out = w.shape[0]
    M = N * H * W
    K = 9 * C_in
    C_pad = _round_up(C_out, LANES)

    # ---- im2col in XLA glue, built directly in bf16 (dominant HBM stream).
    # TODO(synk): replace with in-kernel halo DMA of overlapping NHWC row slabs.
    x_nhwc = jnp.transpose(x, (0, 2, 3, 1)).astype(MXU_DTYPE)
    xp = jnp.pad(x_nhwc, ((0, 0), (1, 1), (1, 1), (0, 0)))
    taps = [xp[:, kh:kh + H, kw:kw + W, :] for kh in range(3) for kw in range(3)]
    patches = jnp.concatenate(taps, axis=-1).reshape(M, K)

    # (C_out, C_in, 3, 3) -> (kh, kw, C_in, C_out) -> (K, C_out), matching tap order;
    # zero-pad channels to a full 128-lane width so every store is lane-dense.
    w_flat = jnp.transpose(w, (2, 3, 1, 0)).reshape(K, C_out).astype(MXU_DTYPE)
    w_flat = jnp.pad(w_flat, ((0, 0), (0, C_pad - C_out)))
    bias_p = jnp.pad(b, (0, C_pad - C_out)).astype(jnp.float32).reshape(1, C_pad)
    gamma_p = jnp.pad(gamma, (0, C_pad - C_out)).astype(jnp.float32).reshape(1, C_pad)
    beta_p = jnp.pad(beta, (0, C_pad - C_out)).astype(jnp.float32).reshape(1, C_pad)

    tm = _pick_tile_m(M)
    m_pad = _round_up(M, tm)
    if m_pad != M:
        patches = jnp.pad(patches, ((0, m_pad - M), (0, 0)))

    resident_bytes = m_pad * C_pad * 4
    kwargs = dict(m_real=M, tm=tm, eps=eps)
    if resident_bytes <= FUSED_RESIDENT_BYTES_LIMIT:
        out = _fused_conv_bn_relu(patches, w_flat, bias_p, gamma_p, beta_p, **kwargs)
    else:
        out = _two_pass_conv_bn_relu(patches, w_flat, bias_p, gamma_p, beta_p, **kwargs)

    return out[:M, :C_out].reshape(N, H * W, C_out)


# ------------------------------------------------------------------ reference

def first_conv_reference(x, params, eps=1e-5):
    y = jax.lax.conv_general_dilated(
        x, params["conv_w"], window_strides=(1, 1), padding=((1, 1), (1, 1)),
        dimension_numbers=("NCHW", "OIHW", "NCHW"))
    y = y + params["conv_b"][None, :, None, None]
    mean = jnp.mean(y, axis=(0, 2, 3), keepdims=True)
    var = jnp.mean((y - mean) ** 2, axis=(0, 2, 3), keepdims=True)
    y = (y - mean) * jax.lax.rsqrt(var + eps)
    y = y * params["bn_w"][None, :, None, None] + params["bn_b"][None, :, None, None]
    y = jnp.maximum(y, 0.0)
    N, C, H, W = y.shape
    return jnp.transpose(y.reshape(N, C, H * W), (0, 2, 1))


# ------------------------------------------------------------------ main

if __name__ == "__main__":
    embed_dim, embed_dim1 = 4, 32          # FirstConv(embed_dim, embed_dim1)
    batch, H, W = 2, 16, 16

    key = jax.random.PRNGKey(0)
    kx, kw, kb = jax.random.split(key, 3)
    lim = 1.0 / math.sqrt(embed_dim * 9)
    params = {
        "conv_w": jax.random.uniform(kw, (embed_dim1, embed_dim, 3, 3), jnp.float32, -lim, lim),
        "conv_b": jax.random.uniform(kb, (embed_dim1,), jnp.float32, -lim, lim),
        "bn_w": jnp.ones((embed_dim1,), jnp.float32),    # fresh BatchNorm2d affine params
        "bn_b": jnp.zeros((embed_dim1,), jnp.float32),
    }
    x = jax.random.normal(kx, (batch, embed_dim, H, W), jnp.float32)

    fwd = jax.jit(first_conv_forward)
    out = jax.block_until_ready(fwd(x, params))
    assert out.shape == (batch, H * W, embed_dim1), out.shape

    ref = first_conv_reference(x, params)
    max_err = float(jnp.max(jnp.abs(out - ref)))
    assert max_err < 0.1, f"max abs error vs reference: {max_err}"   # bf16 MXU tolerance

    print("KERNEL_OK")
</pallas_src>

<mosaic_0001>
module attributes {stable_mosaic.version = 11 : i64} {
  func.func @_fused_conv_bn_relu_kernel(%arg0: i32, %arg1: memref<512x36xbf16, #tpu.memory_space<vmem>>, %arg2: memref<36x128xbf16, #tpu.memory_space<vmem>>, %arg3: memref<1x128xf32, #tpu.memory_space<vmem>>, %arg4: memref<1x128xf32, #tpu.memory_space<vmem>>, %arg5: memref<1x128xf32, #tpu.memory_space<vmem>>, %arg6: memref<512x128xf32, #tpu.memory_space<vmem>>, %arg7: memref<1x128xf32, #tpu.memory_space<vmem>>, %arg8: memref<1x128xf32, #tpu.memory_space<vmem>>) attributes {dimension_semantics = [#tpu.dimension_semantics<arbitrary>], iteration_bounds = array<i64: 1>, scalar_prefetch = 0 : i64, scratch_operands = 2 : i64, tpu.core_type = #tpu.core_type<tc>, window_params = [{transform_indices = @transform_0, window_bounds = array<i64: 512, 36>}, {pipeline_mode = #tpu.pipeline_mode<synchronous>, transform_indices = @transform_1, window_bounds = array<i64: 36, 128>}, {pipeline_mode = #tpu.pipeline_mode<synchronous>, transform_indices = @transform_2, window_bounds = array<i64: 1, 128>}, {pipeline_mode = #tpu.pipeline_mode<synchronous>, transform_indices = @transform_3, window_bounds = array<i64: 1, 128>}, {pipeline_mode = #tpu.pipeline_mode<synchronous>, transform_indices = @transform_4, window_bounds = array<i64: 1, 128>}, {pipeline_mode = #tpu.pipeline_mode<synchronous>, transform_indices = @transform_5, window_bounds = array<i64: 512, 128>}]} {
    %c0_i32 = arith.constant 0 : i32
    %0 = arith.cmpi eq, %arg0, %c0_i32 : i32
    %1 = arith.extui %0 : i1 to i32
    %c0_i32_0 = arith.constant 0 : i32
    %2 = arith.cmpi ne, %1, %c0_i32_0 : i32
    scf.if %2 {
      %cst_21 = arith.constant 0.000000e+00 : f32
      %30 = vector.broadcast %cst_21 : f32 to vector<1x128xf32>
      %c0_22 = arith.constant 0 : index
      %c0_23 = arith.constant 0 : index
      %31 = vector.load %arg7[%c0_22, %c0_23] : memref<1x128xf32, #tpu.memory_space<vmem>>, vector<1x128xf32>
      tpu.vector_store %arg7[%c0_22, %c0_23], %30 {strides = array<i32>} : memref<1x128xf32, #tpu.memory_space<vmem>>, vector<1x128xf32>,
      %cst_24 = arith.constant 0.000000e+00 : f32
      %32 = vector.broadcast %cst_24 : f32 to vector<1x128xf32>
      %c0_25 = arith.constant 0 : index
      %c0_26 = arith.constant 0 : index
      %33 = vector.load %arg8[%c0_25, %c0_26] : memref<1x128xf32, #tpu.memory_space<vmem>>, vector<1x128xf32>
      tpu.vector_store %arg8[%c0_25, %c0_26], %32 {strides = array<i32>} : memref<1x128xf32, #tpu.memory_space<vmem>>, vector<1x128xf32>,
    } else {
    }
    %c0 = arith.constant 0 : index
    %c0_1 = arith.constant 0 : index
    %3 = vector.load %arg1[%c0, %c0_1] : memref<512x36xbf16, #tpu.memory_space<vmem>>, vector<512x36xbf16>
    %c0_2 = arith.constant 0 : index
    %c0_3 = arith.constant 0 : index
    %4 = vector.load %arg2[%c0_2, %c0_3] : memref<36x128xbf16, #tpu.memory_space<vmem>>, vector<36x128xbf16>
    %cst = arith.constant dense<0.000000e+00> : vector<512x128xf32>
    %5 = tpu.matmul %3, %4, %cst {dimension_numbers = #tpu.dot_dimension_numbers<[1], [0], [0], [1], [0, 0, 1, 1], [], []>} : vector<512x36xbf16>, vector<36x128xbf16>, vector<512x128xf32> -> vector<512x128xf32>
    %c0_4 = arith.constant 0 : index
    %c0_5 = arith.constant 0 : index
    %6 = vector.load %arg3[%c0_4, %c0_5] : memref<1x128xf32, #tpu.memory_space<vmem>>, vector<1x128xf32>
    %7 = vector.broadcast %6 : vector<1x128xf32> to vector<512x128xf32>
    %8 = arith.addf %5, %7 : vector<512x128xf32>
    %c512_i32 = arith.constant 512 : i32
    %9 = arith.muli %arg0, %c512_i32 : i32
    %10 = tpu.assume_multiple %9, 512 : i32
    %11 = arith.index_cast %10 : i32 to index
    %c0_6 = arith.constant 0 : index
    %12 = vector.load %arg6[%11, %c0_6] : memref<512x128xf32, #tpu.memory_space<vmem>>, vector<512x128xf32>
    tpu.vector_store %arg6[%11, %c0_6], %8 {strides = array<i32>} : memref<512x128xf32, #tpu.memory_space<vmem>>, vector<512x128xf32>,
    %c0_7 = arith.constant 0 : index
    %c0_8 = arith.constant 0 : index
    %13 = vector.load %arg3[%c0_7, %c0_8] : memref<1x128xf32, #tpu.memory_space<vmem>>, vector<1x128xf32>
    %14 = vector.broadcast %13 : vector<1x128xf32> to vector<512x128xf32>
    %15 = arith.subf %8, %14 : vector<512x128xf32>
    %c0_9 = arith.constant 0 : index
    %c0_10 = arith.constant 0 : index
    %16 = vector.load %arg7[%c0_9, %c0_10] : memref<1x128xf32, #tpu.memory_space<vmem>>, vector<1x128xf32>
    %cst_11 = arith.constant dense<0.000000e+00> : vector<128xf32>
    %17 = vector.multi_reduction <add>, %15, %cst_11 [0] : vector<512x128xf32> to vector<128xf32>
    %18 = vector.shape_cast %17 : vector<128xf32> to vector<1x128xf32>
    %19 = arith.addf %16, %18 : vector<1x128xf32>
    %c0_12 = arith.constant 0 : index
    %c0_13 = arith.constant 0 : index
    %20 = vector.load %arg7[%c0_12, %c0_13] : memref<1x128xf32, #tpu.memory_space<vmem>>, vector<1x128xf32>
    tpu.vector_store %arg7[%c0_12, %c0_13], %19 {strides = array<i32>} : memref<1x128xf32, #tpu.memory_space<vmem>>, vector<1x128xf32>,
    %c0_14 = arith.constant 0 : index
    %c0_15 = arith.constant 0 : index
    %21 = vector.load %arg8[%c0_14, %c0_15] : memref<1x128xf32, #tpu.memory_space<vmem>>, vector<1x128xf32>
    %22 = arith.mulf %15, %15 : vector<512x128xf32>
    %cst_16 = arith.constant dense<0.000000e+00> : vector<128xf32>
    %23 = vector.multi_reduction <add>, %22, %cst_16 [0] : vector<512x128xf32> to vector<128xf32>
    %24 = vector.shape_cast %23 : vector<128xf32> to vector<1x128xf32>
    %25 = arith.addf %21, %24 : vector<1x128xf32>
    %c0_17 = arith.constant 0 : index
    %c0_18 = arith.constant 0 : index
    %26 = vector.load %arg8[%c0_17, %c0_18] : memref<1x128xf32, #tpu.memory_space<vmem>>, vector<1x128xf32>
    tpu.vector_store %arg8[%c0_17, %c0_18], %25 {strides = array<i32>} : memref<1x128xf32, #tpu.memory_space<vmem>>, vector<1x128xf32>,
    %c0_i32_19 = arith.constant 0 : i32
    %27 = arith.cmpi eq, %arg0, %c0_i32_19 : i32
    %28 = arith.extui %27 : i1 to i32
    %c0_i32_20 = arith.constant 0 : i32
    %29 = arith.cmpi ne, %28, %c0_i32_20 : i32
    scf.if %29 {
      %c0_21 = arith.constant 0 : index
      %c0_22 = arith.constant 0 : index
      %30 = vector.load %arg7[%c0_21, %c0_22] : memref<1x128xf32, #tpu.memory_space<vmem>>, vector<1x128xf32>
      %cst_23 = arith.constant 0.001953125 : f32
      %31 = vector.broadcast %cst_23 : f32 to vector<1x128xf32>
      %32 = arith.mulf %30, %31 : vector<1x128xf32>
      %c0_24 = arith.constant 0 : index
      %c0_25 = arith.constant 0 : index
      %33 = vector.load %arg8[%c0_24, %c0_25] : memref<1x128xf32, #tpu.memory_space<vmem>>, vector<1x128xf32>
      %cst_26 = arith.constant 0.001953125 : f32
      %34 = vector.broadcast %cst_26 : f32 to vector<1x128xf32>
      %35 = arith.mulf %33, %34 : vector<1x128xf32>
      %36 = arith.mulf %32, %32 : vector<1x128xf32>
      %37 = arith.subf %35, %36 : vector<1x128xf32>
      %cst_27 = arith.constant 0.000000e+00 : f32
      %38 = vector.broadcast %cst_27 : f32 to vector<1x128xf32>
      %39 = arith.maximumf %37, %38 : vector<1x128xf32>
      %c0_28 = arith.constant 0 : index
      %c0_29 = arith.constant 0 : index
      %40 = vector.load %arg4[%c0_28, %c0_29] : memref<1x128xf32, #tpu.memory_space<vmem>>, vector<1x128xf32>
      %cst_30 = arith.constant 9.99999974E-6 : f32
      %41 = vector.broadcast %cst_30 : f32 to vector<1x128xf32>
      %42 = arith.addf %39, %41 : vector<1x128xf32>
      %43 = math.rsqrt %42 : vector<1x128xf32>
      %44 = arith.mulf %40, %43 : vector<1x128xf32>
      %c0_31 = arith.constant 0 : index
      %c0_32 = arith.constant 0 : index
      %45 = vector.load %arg5[%c0_31, %c0_32] : memref<1x128xf32, #tpu.memory_space<vmem>>, vector<1x128xf32>
      %c0_33 = arith.constant 0 : index
      %c0_34 = arith.constant 0 : index
      %46 = vector.load %arg3[%c0_33, %c0_34] : memref<1x128xf32, #tpu.memory_space<vmem>>, vector<1x128xf32>
      %47 = arith.addf %46, %32 : vector<1x128xf32>
      %48 = arith.mulf %47, %44 : vector<1x128xf32>
      %49 = arith.subf %45, %48 : vector<1x128xf32>
      %c0_i32_35 = arith.constant 0 : i32
      %c1_i32 = arith.constant 1 : i32
      %50 = arith.muli %c0_i32_35, %c1_i32 : i32
      %c0_i32_36 = arith.constant 0 : i32
      %51 = arith.addi %c0_i32_36, %50 : i32
      %c512_i32_37 = arith.constant 512 : i32
      %52 = arith.muli %51, %c512_i32_37 : i32
      %53 = tpu.assume_multiple %52, 512 : i32
      %54 = arith.index_cast %53 : i32 to index
      %c0_38 = arith.constant 0 : index
      %55 = vector.load %arg6[%54, %c0_38] : memref<512x128xf32, #tpu.memory_space<vmem>>, vector<512x128xf32>
      %56 = vector.broadcast %44 : vector<1x128xf32> to vector<512x128xf32>
      %57 = arith.mulf %55, %56 : vector<512x128xf32>
      %58 = vector.broadcast %49 : vector<1x128xf32> to vector<512x128xf32>
      %59 = arith.addf %57, %58 : vector<512x128xf32>
      %cst_39 = arith.constant 0.000000e+00 : f32
      %60 = vector.broadcast %cst_39 : f32 to vector<512x128xf32>
      %61 = arith.maximumf %59, %60 : vector<512x128xf32>
      %62 = arith.index_cast %53 : i32 to index
      %c0_40 = arith.constant 0 : index
      %63 = vector.load %arg6[%62, %c0_40] : memref<512x128xf32, #tpu.memory_space<vmem>>, vector<512x128xf32>
      tpu.vector_store %arg6[%62, %c0_40], %61 {strides = array<i32>} : memref<512x128xf32, #tpu.memory_space<vmem>>, vector<512x128xf32>,
      %c1_i32_41 = arith.constant 1 : i32
    } else {
    }
    return
  }
  func.func @transform_0(%arg0: i32) -> (i32, i32) {
    %c0_i32 = arith.constant 0 : i32
    %c0_i32_0 = arith.constant 0 : i32
    return %arg0, %c0_i32 : i32, i32
  }
  func.func @transform_1(%arg0: i32) -> (i32, i32) {
    %c0_i32 = arith.constant 0 : i32
    %c0_i32_0 = arith.constant 0 : i32
    %c0_i32_1 = arith.constant 0 : i32
    return %c0_i32, %c0_i32_0 : i32, i32
  }
  func.func @transform_2(%arg0: i32) -> (i32, i32) {
    %c0_i32 = arith.constant 0 : i32
    %c0_i32_0 = arith.constant 0 : i32
    %c0_i32_1 = arith.constant 0 : i32
    return %c0_i32, %c0_i32_0 : i32, i32
  }
  func.func @transform_3(%arg0: i32) -> (i32, i32) {
    %c0_i32 = arith.constant 0 : i32
    %c0_i32_0 = arith.constant 0 : i32
    %c0_i32_1 = arith.constant 0 : i32
    return %c0_i32, %c0_i32_0 : i32, i32
  }
  func.func @transform_4(%arg0: i32) -> (i32, i32) {
    %c0_i32 = arith.constant 0 : i32
    %c0_i32_0 = arith.constant 0 : i32
    %c0_i32_1 = arith.constant 0 : i32
    return %c0_i32, %c0_i32_0 : i32, i32
  }
  func.func @transform_5(%arg0: i32) -> (i32, i32) {
    %c0_i32 = arith.constant 0 : i32
    %c0_i32_0 = arith.constant 0 : i32
    %c0_i32_1 = arith.constant 0 : i32
    return %c0_i32, %c0_i32_0 : i32, i32
  }
}

</mosaic_0001>

<bundles_post_ra>
// kernel: first_conv_forward.1
= control target key start
LH: loop header
LB: loop body
LE: loop exit
PB: predicated region body
PF: predicated region fallthrough
CT: control target
= control target key end

     0   :  { %vm278_vm0 = vcmask 293888   ;;  %vm375_vm1 = vcmask 1041408   ;;  %v1588_v39 = vmov 0.0   ;;  %s2971_s1 = inlined_call_operand.vmem [shape: bf16[36,128], index: 1, kind: input, shape index: {}]   ;;  %s2972_s0 = inlined_call_operand.vmem [shape: bf16[512,36], index: 0, kind: input, shape index: {}]   ;;  %s2973_s2 = inlined_call_operand.vmem [shape: f32[1,128], index: 2, kind: input, shape index: {}]   ;;  %s2974_s3 = inlined_call_operand.vmem [shape: f32[1,128], index: 3, kind: input, shape index: {}]   ;;  %s2975_s4 = inlined_call_operand.vmem [shape: f32[1,128], index: 4, kind: input, shape index: {}]   ;;  %s2976_s5 = inlined_call_operand.vmem [shape: f32[512,128], index: 5, kind: output, shape index: {}]  }
   0x1   :  { %v1551_v0 = vld [vmem:[%s2971_s1] sm:$0xff]   ;;  %v1552_v1 = vld [vmem:[%s2971_s1 + $0x8] sm:$0xff]   ;;  %v1553_v2 = vld [vmem:[%s2971_s1 + $0x10] ss:$0 sps:$4 sm:$0x33]  }
   0x2   :  { %1472 = vmatprep.subr.bf16.mxu0 %v1551_v0  ;;  %v1554_v3 = vld [vmem:[%s2972_s0] sm:$0xff]   ;;  %1542 = vmatprep.subr.bf16.mxu1 %v1551_v0  ;;  %v377_v4 = vsel %vm375_vm1, %v1553_v2, 0  ;;  %v1555_v5 = vld [vmem:[%s2972_s0 + $0x8] sm:$0xff]   ;;  %v1556_v6 = vld [vmem:[%s2972_s0 + $0x10] sm:$0xff]   ;;  %25 = vst [vmem:[#allocation2] sm:$0x1] %v1588_v39 }
   0x3   :  { %1473 = vmatpush3.bf16.msra.mxu0 %v1551_v0  ;;  %1545 = vmatpush3.bf16.msra.mxu1 %v1551_v0  ;;  %v1557_v7 = vld [vmem:[%s2972_s0 + $0x18] sm:$0xff]   ;;  %v1558_v8 = vld [vmem:[%s2972_s0 + $0x20] sm:$0xff]   ;;  %v1571_v10 = vld [vmem:[%s2972_s0 + $0x88] sm:$0xff]   ;;  %26 = vst [vmem:[#allocation3] sm:$0x1] %v1588_v39 }
   0x4   :  { %1474 = vmatprep.subr.bf16.mxu0 %v1552_v1  ;;  %1478 = vmatprep.mubr.msk.bf16.mxu0 %vm278_vm0, %v1554_v3  ;;  %v1570_v9 = vld [vmem:[%s2972_s0 + $0x80] sm:$0xff]   ;;  %v1572_v11 = vld [vmem:[%s2972_s0 + $0x90] sm:$0xff]   ;;  %v1559_v12 = vld [vmem:[%s2972_s0 + $0x28] sm:$0xff]  }
   0x5   :  { %1543 = vmatprep.subr.bf16.mxu1 %v1552_v1  ;;  %1510 = vmatprep.mubr.msk.bf16.mxu1 %vm278_vm0, %v1570_v9  ;;  %v1560_v13 = vld [vmem:[%s2972_s0 + $0x30] sm:$0xff]   ;;  %v1573_v14 = vld [vmem:[%s2972_s0 + $0x98] sm:$0xff]   ;;  %v1574_v15 = vld [vmem:[%s2972_s0 + $0xa0] sm:$0xff]  }
   0x6   :  { %v1561_v16 = vld [vmem:[%s2972_s0 + $0x38] sm:$0xff]   ;;  %v1575_v17 = vld [vmem:[%s2972_s0 + $0xa8] sm:$0xff]   ;;  %v1562_v18 = vld [vmem:[%s2972_s0 + $0x40] sm:$0xff]  }
   0x7   :  { %1475 = vmatpush3.bf16.msra.mxu0 %v1552_v1  ;;  %1546 = vmatpush3.bf16.msra.mxu1 %v1552_v1  ;;  %v1576_v19 = vld [vmem:[%s2972_s0 + $0xb0] sm:$0xff]   ;;  %v1563_v20 = vld [vmem:[%s2972_s0 + $0x48] sm:$0xff]   ;;  %v1577_v21 = vld [vmem:[%s2972_s0 + $0xb8] sm:$0xff]  }
   0x8   :  { %1548 = vmatprep.subr.msk.bf16.mxu0 %vm375_vm1, %v1553_v2  ;;  %1549 = vmatprep.subr.msk.bf16.mxu1 %vm375_vm1, %v1553_v2  ;;  %v1564_v22 = vld [vmem:[%s2972_s0 + $0x50] sm:$0xff]   ;;  %v1578_v23 = vld [vmem:[%s2972_s0 + $0xc0] sm:$0xff]   ;;  %v1565_v24 = vld [vmem:[%s2972_s0 + $0x58] sm:$0xff]  }
   0x9   :  { %v1579_v25 = vld [vmem:[%s2972_s0 + $0xc8] sm:$0xff]   ;;  %v1566_v26 = vld [vmem:[%s2972_s0 + $0x60] sm:$0xff]   ;;  %v1580_v27 = vld [vmem:[%s2972_s0 + $0xd0] sm:$0xff]  }
   0xa   :  { %v1567_v28 = vld [vmem:[%s2972_s0 + $0x68] sm:$0xff]   ;;  %v1581_v29 = vld [vmem:[%s2972_s0 + $0xd8] sm:$0xff]   ;;  %v1568_v30 = vld [vmem:[%s2972_s0 + $0x70] sm:$0xff]  }
   0xb   :  { %1477 = vmatpush3.bf16.msra.mxu0 %v377_v4  ;;  %1547 = vmatpush3.bf16.msra.mxu1 %v377_v4  ;;  %v1582_v31 = vld [vmem:[%s2972_s0 + $0xe0] sm:$0xff]   ;;  %v1569_v32 = vld [vmem:[%s2972_s0 + $0x78] sm:$0xff]   ;;  %v1583_v33 = vld [vmem:[%s2972_s0 + $0xe8] sm:$0xff]  }
   0xc   :  { %v1584_v34 = vld [vmem:[%s2972_s0 + $0xf0] sm:$0xff]   ;;  %v1585_v35 = vld [vmem:[%s2972_s0 + $0xf8] sm:$0xff]   ;;  %v1759_v36 = vld [vmem:[%s2973_s2] ss:$0 sm:$0xff] }
   0xe   :  { %1479 = vmatmul.mubr.msk.bf16.vlgmr.msra.gmra.mrb[0].mxu0 %vm278_vm0, %v1555_v5  ;;  %1511 = vmatmul.mubr.msk.bf16.vlgmr.msra.gmra.mrb[0].mxu1 %vm278_vm0, %v1571_v10 }
   0xf   :  { %1482 = vmatprep.mubr.msk.bf16.mxu0 %vm278_vm0, %v1556_v6  ;;  %1514 = vmatprep.mubr.msk.bf16.mxu1 %vm278_vm0, %v1572_v11 }
  0x16   :  { %1483 = vmatmul.mubr.msk.bf16.gmra.mrb[4].mxu0 %vm278_vm0, %v1557_v7  ;;  %1515 = vmatmul.mubr.msk.bf16.gmra.mrb[4].mxu1 %vm278_vm0, %v1573_v14 }
  0x17   :  { %1486 = vmatprep.mubr.msk.bf16.mxu0 %vm278_vm0, %v1558_v8  ;;  %1518 = vmatprep.mubr.msk.bf16.mxu1 %vm278_vm0, %v1574_v15 }
  0x1e   :  { %1487 = vmatmul.mubr.msk.bf16.gmra.mrb[8].mxu0 %vm278_vm0, %v1559_v12  ;;  %1519 = vmatmul.mubr.msk.bf16.gmra.mrb[8].mxu1 %vm278_vm0, %v1575_v17 }
  0x1f   :  { %1490 = vmatprep.mubr.msk.bf16.mxu0 %vm278_vm0, %v1560_v13  ;;  %1522 = vmatprep.mubr.msk.bf16.mxu1 %vm278_vm0, %v1576_v19 }
  0x26   :  { %1491 = vmatmul.mubr.msk.bf16.gmra.mrb[12].mxu0 %vm278_vm0, %v1561_v16  ;;  %1523 = vmatmul.mubr.msk.bf16.gmra.mrb[12].mxu1 %vm278_vm0, %v1577_v21 }
  0x27   :  { %1494 = vmatprep.mubr.msk.bf16.mxu0 %vm278_vm0, %v1562_v18  ;;  %1526 = vmatprep.mubr.msk.bf16.mxu1 %vm278_vm0, %v1578_v23 }
  0x2e   :  { %1495 = vmatmul.mubr.msk.bf16.gmra.mrb[16].mxu0 %vm278_vm0, %v1563_v20  ;;  %1527 = vmatmul.mubr.msk.bf16.gmra.mrb[16].mxu1 %vm278_vm0, %v1579_v25 }
  0x2f   :  { %1498 = vmatprep.mubr.msk.bf16.mxu0 %vm278_vm0, %v1564_v22  ;;  %1530 = vmatprep.mubr.msk.bf16.mxu1 %vm278_vm0, %v1580_v27 }
  0x36   :  { %1499 = vmatmul.mubr.msk.bf16.gmra.mrb[20].mxu0 %vm278_vm0, %v1565_v24  ;;  %1531 = vmatmul.mubr.msk.bf16.gmra.mrb[20].mxu1 %vm278_vm0, %v1581_v29 }
  0x37   :  { %1502 = vmatprep.mubr.msk.bf16.mxu0 %vm278_vm0, %v1566_v26  ;;  %1534 = vmatprep.mubr.msk.bf16.mxu1 %vm278_vm0, %v1582_v31 }
  0x3e   :  { %1503 = vmatmul.mubr.msk.bf16.gmra.mrb[24].mxu0 %vm278_vm0, %v1567_v28  ;;  %1535 = vmatmul.mubr.msk.bf16.gmra.mrb[24].mxu1 %vm278_vm0, %v1583_v33 }
  0x3f   :  { %1506 = vmatprep.mubr.msk.bf16.mxu0 %vm278_vm0, %v1568_v30  ;;  %1538 = vmatprep.mubr.msk.bf16.mxu1 %vm278_vm0, %v1584_v34 }
  0x46   :  { %1507 = vmatmul.mubr.msk.bf16.gmra.mrb[28].mxu0 %vm278_vm0, %v1569_v32  ;;  %1539 = vmatmul.mubr.msk.bf16.gmra.mrb[28].mxu1 %vm278_vm0, %v1585_v35 }
  0xe1   :  { %v1480_v37 = vpop.f32.mrb[0].mxu0  ;;  %v1781_v54 = vpop.f32.mrb[0].mxu1 }
  0xe2   :  { %v413_v38 = vpop.f32.mrb[1].mxu0  ;;  %v1762_v40 = vadd.f32 %v1480_v37, %v1759_v36  ;;  %v1786_v57 = vpop.f32.mrb[1].mxu1 }
  0xe3   :  { %v1765_v41 = vadd.f32 %v1759_v36, %v413_v38  ;;  %v1481_v42 = vpop.f32.mrb[2].mxu0  ;;  %v1791_v63 = vpop.f32.mrb[2].mxu1 }
  0xe4   :  { %v1768_v43 = vadd.f32 %v1481_v42, %v1759_v36  ;;  %v416_v44 = vpop.f32.mrb[3].mxu0  ;;  %v743_v47 = vsub.f32 %v1762_v40, %v1759_v36  ;;  %v1796_v3 = vpop.f32.mrb[3].mxu1 }
  0xe5   :  { %v741_v45 = vsub.f32 %v1765_v41, %v1759_v36  ;;  %v1773_v46 = vadd.f32 %v1759_v36, %v416_v44 }
  0xe6   :  { %v744_v49 = vsub.f32 %v1768_v43, %v1759_v36  ;;  %v880_v58 = vmul.f32 %v743_v47, %v743_v47 }
  0xe7   :  { %v742_v48 = vsub.f32 %v1773_v46, %v1759_v36  ;;  %v878_v50 = vmul.f32 %v741_v45, %v741_v45 }
  0xe8   :  { %v881_v0 = vmul.f32 %v744_v49, %v744_v49 }
  0xe9   :  { %v806_v51 = vadd.f32 %v742_v48, %v741_v45  ;;  %v879_v52 = vmul.f32 %v742_v48, %v742_v48  ;;  %v1484_v53 = vpop.f32.mrb[4].mxu0  ;;  %v1809_v18 = vpop.f32.mrb[4].mxu1 }
  0xea   :  { %v1784_v55 = vadd.f32 %v1484_v53, %v1759_v36  ;;  %v429_v56 = vpop.f32.mrb[5].mxu0  ;;  %v1814_v21 = vpop.f32.mrb[5].mxu1 }
  0xeb   :  { %v807_v59 = vadd.f32 %v806_v51, %v743_v47  ;;  %v942_v60 = vadd.f32 %v879_v52, %v878_v50  ;;  %v1789_v61 = vadd.f32 %v1759_v36, %v429_v56  ;;  %v1485_v62 = vpop.f32.mrb[6].mxu0  ;;  %v1819_v27 = vpop.f32.mrb[6].mxu1 }
  0xec   :  { %v1794_v1 = vadd.f32 %v1485_v62, %v1759_v36  ;;  %v432_v2 = vpop.f32.mrb[7].mxu0  ;;  %v747_v8 = vsub.f32 %v1784_v55, %v1759_v36  ;;  %v1824_v31 = vpop.f32.mrb[7].mxu1 }
  0xed   :  { %v943_v4 = vadd.f32 %v942_v60, %v880_v58  ;;  %v745_v5 = vsub.f32 %v1789_v61, %v1759_v36  ;;  %v808_v6 = vadd.f32 %v807_v59, %v744_v49  ;;  %v1801_v7 = vadd.f32 %v1759_v36, %v432_v2 }
  0xee   :  { %v748_v13 = vsub.f32 %v1794_v1, %v1759_v36  ;;  %v884_v22 = vmul.f32 %v747_v8, %v747_v8 }
  0xef   :  { %v809_v9 = vadd.f32 %v808_v6, %v745_v5  ;;  %v882_v10 = vmul.f32 %v745_v5, %v745_v5  ;;  %v944_v11 = vadd.f32 %v943_v4, %v881_v0  ;;  %v746_v12 = vsub.f32 %v1801_v7, %v1759_v36 }
  0xf0   :  { %v885_v28 = vmul.f32 %v748_v13, %v748_v13 }
  0xf1   :  { %v945_v14 = vadd.f32 %v944_v11, %v882_v10  ;;  %v810_v15 = vadd.f32 %v809_v9, %v746_v12  ;;  %v883_v16 = vmul.f32 %v746_v12, %v746_v12  ;;  %v1488_v17 = vpop.f32.mrb[8].mxu0  ;;  %v1837_v51 = vpop.f32.mrb[8].mxu1 }
  0xf2   :  { %v1812_v19 = vadd.f32 %v1488_v17, %v1759_v36  ;;  %v445_v20 = vpop.f32.mrb[9].mxu0  ;;  %v1842_v56 = vpop.f32.mrb[9].mxu1 }
  0xf3   :  { %v811_v23 = vadd.f32 %v810_v15, %v747_v8  ;;  %v946_v24 = vadd.f32 %v945_v14, %v883_v16  ;;  %v1817_v25 = vadd.f32 %v1759_v36, %v445_v20  ;;  %v1489_v26 = vpop.f32.mrb[10].mxu0  ;;  %v1847_v2 = vpop.f32.mrb[10].mxu1 }
  0xf4   :  { %v1822_v29 = vadd.f32 %v1489_v26, %v1759_v36  ;;  %v448_v30 = vpop.f32.mrb[11].mxu0  ;;  %v751_v37 = vsub.f32 %v1812_v19, %v1759_v36  ;;  %v1852_v8 = vpop.f32.mrb[11].mxu1 }
  0xf5   :  { %v947_v32 = vadd.f32 %v946_v24, %v884_v22  ;;  %v749_v33 = vsub.f32 %v1817_v25, %v1759_v36  ;;  %v812_v34 = vadd.f32 %v811_v23, %v748_v13  ;;  %v1829_v35 = vadd.f32 %v1759_v36, %v448_v30 }
  0xf6   :  { %v752_v45 = vsub.f32 %v1822_v29, %v1759_v36  ;;  %v888_v58 = vmul.f32 %v751_v37, %v751_v37 }
  0xf7   :  { %v813_v38 = vadd.f32 %v812_v34, %v749_v33  ;;  %v886_v39 = vmul.f32 %v749_v33, %v749_v33  ;;  %v948_v42 = vadd.f32 %v947_v32, %v885_v28  ;;  %v750_v44 = vsub.f32 %v1829_v35, %v1759_v36 }
  0xf8   :  { %v889_v4 = vmul.f32 %v752_v45, %v752_v45 }
  0xf9   :  { %v949_v47 = vadd.f32 %v948_v42, %v886_v39  ;;  %v814_v48 = vadd.f32 %v813_v38, %v750_v44  ;;  %v887_v49 = vmul.f32 %v750_v44, %v750_v44  ;;  %v1492_v50 = vpop.f32.mrb[12].mxu0  ;;  %v1865_v28 = vpop.f32.mrb[12].mxu1 }
  0xfa   :  { %v1840_v52 = vadd.f32 %v1492_v50, %v1759_v36  ;;  %v461_v53 = vpop.f32.mrb[13].mxu0  ;;  %v1870_v33 = vpop.f32.mrb[13].mxu1 }
  0xfb   :  { %v815_v59 = vadd.f32 %v814_v48, %v751_v37  ;;  %v950_v60 = vadd.f32 %v949_v47, %v887_v49  ;;  %v1845_v62 = vadd.f32 %v1759_v36, %v461_v53  ;;  %v1493_v0 = vpop.f32.mrb[14].mxu0  ;;  %v1875_v44 = vpop.f32.mrb[14].mxu1 }
  0xfc   :  { %3004 = vst [vmem:[#allocation4_spill] sm:$0xff] %v1840_v52  ;;  %v1850_v5 = vadd.f32 %v1493_v0, %v1759_v36  ;;  %v464_v6 = vpop.f32.mrb[15].mxu0  ;;  %v755_v13 = vsub.f32 %v1840_v52, %v1759_v36  ;;  %v1880_v49 = vpop.f32.mrb[15].mxu1 }
  0xfd   :  { %v951_v9 = vadd.f32 %v950_v60, %v888_v58  ;;  %v753_v10 = vsub.f32 %v1845_v62, %v1759_v36  ;;  %v816_v11 = vadd.f32 %v815_v59, %v752_v45  ;;  %v1857_v12 = vadd.f32 %v1759_v36, %v464_v6 }
  0xfe   :  { %3005 = vst [vmem:[#allocation5_spill] sm:$0xff] %v1850_v5  ;;  %v756_v20 = vsub.f32 %v1850_v5, %v1759_v36  ;;  %v892_v34 = vmul.f32 %v755_v13, %v755_v13 }
  0xff   :  { %v817_v14 = vadd.f32 %v816_v11, %v753_v10  ;;  %v890_v15 = vmul.f32 %v753_v10, %v753_v10  ;;  %v952_v16 = vadd.f32 %v951_v9, %v889_v4  ;;  %v754_v17 = vsub.f32 %v1857_v12, %v1759_v36 }
 0x100   :  { %v893_v45 = vmul.f32 %v756_v20, %v756_v20 }
 0x101   :  { %v953_v22 = vadd.f32 %v952_v16, %v890_v15  ;;  %v818_v23 = vadd.f32 %v817_v14, %v754_v17  ;;  %v891_v24 = vmul.f32 %v754_v17, %v754_v17  ;;  %v1496_v26 = vpop.f32.mrb[16].mxu0  ;;  %v1893_v16 = vpop.f32.mrb[16].mxu1 }
 0x102   :  { %v1868_v30 = vadd.f32 %v1496_v26, %v1759_v36  ;;  %v477_v32 = vpop.f32.mrb[17].mxu0 }
 0x103   :  { %v819_v37 = vadd.f32 %v818_v23, %v755_v13  ;;  %v954_v38 = vadd.f32 %v953_v22, %v891_v24  ;;  %v1873_v39 = vadd.f32 %v1759_v36, %v477_v32  ;;  %v1497_v42 = vpop.f32.mrb[18].mxu0  ;;  %v1898_v22 = vpop.f32.mrb[17].mxu1 }
 0x104   :  { %3006 = vst [vmem:[#allocation6_spill] sm:$0xff] %v1868_v30  ;;  %v1878_v47 = vadd.f32 %v1497_v42, %v1759_v36  ;;  %v480_v48 = vpop.f32.mrb[19].mxu0  ;;  %v759_v60 = vsub.f32 %v1868_v30, %v1759_v36 }
 0x105   :  { %3007 = vst [vmem:[#allocation7_spill] sm:$0xff] %v1873_v39  ;;  %v955_v50 = vadd.f32 %v954_v38, %v892_v34  ;;  %v757_v53 = vsub.f32 %v1873_v39, %v1759_v36  ;;  %v820_v58 = vadd.f32 %v819_v37, %v756_v20  ;;  %v1885_v59 = vadd.f32 %v1759_v36, %v480_v48  ;;  %v1903_v37 = vpop.f32.mrb[18].mxu1 }
 0x106   :  { %3008 = vst [vmem:[#allocation8_spill] sm:$0xff] %v1878_v47  ;;  %v760_v10 = vsub.f32 %v1878_v47, %v1759_v36  ;;  %v896_v23 = vmul.f32 %v759_v60, %v759_v60  ;;  %v1908_v48 = vpop.f32.mrb[19].mxu1 }
 0x107   :  { %3009 = vst [vmem:[#allocation9_spill] sm:$0xff] %v1885_v59  ;;  %v821_v0 = vadd.f32 %v820_v58, %v757_v53  ;;  %v894_v4 = vmul.f32 %v757_v53, %v757_v53  ;;  %v956_v6 = vadd.f32 %v955_v50, %v893_v45  ;;  %v758_v9 = vsub.f32 %v1885_v59, %v1759_v36 }
 0x108   :  { %v897_v38 = vmul.f32 %v760_v10, %v760_v10 }
 0x109   :  { %v957_v11 = vadd.f32 %v956_v6, %v894_v4  ;;  %v822_v13 = vadd.f32 %v821_v0, %v758_v9  ;;  %v895_v14 = vmul.f32 %v758_v9, %v758_v9  ;;  %v1500_v15 = vpop.f32.mrb[20].mxu0 }
 0x10a   :  { %v1896_v17 = vadd.f32 %v1500_v15, %v1759_v36  ;;  %v493_v20 = vpop.f32.mrb[21].mxu0 }
 0x10b   :  { %v823_v24 = vadd.f32 %v822_v13, %v759_v60  ;;  %v958_v26 = vadd.f32 %v957_v11, %v895_v14  ;;  %v1901_v32 = vadd.f32 %v1759_v36, %v493_v20  ;;  %v1501_v34 = vpop.f32.mrb[22].mxu0 }
 0x10c   :  { %3010 = vst [vmem:[#allocation10_spill] sm:$0xff] %v1896_v17  ;;  %v1906_v42 = vadd.f32 %v1501_v34, %v1759_v36  ;;  %v496_v45 = vpop.f32.mrb[23].mxu0  ;;  %v763_v0 = vsub.f32 %v1896_v17, %v1759_v36 }
 0x10d   :  { %3011 = vst [vmem:[#allocation11_spill] sm:$0xff] %v1901_v32  ;;  %v959_v50 = vadd.f32 %v958_v26, %v896_v23  ;;  %v761_v53 = vsub.f32 %v1901_v32, %v1759_v36  ;;  %v824_v58 = vadd.f32 %v823_v24, %v760_v10  ;;  %v1913_v60 = vadd.f32 %v1759_v36, %v496_v45  ;;  %v1921_v10 = vpop.f32.mrb[20].mxu1 }
 0x10e   :  { %3012 = vst [vmem:[#allocation12_spill] sm:$0xff] %v1906_v42  ;;  %v764_v13 = vsub.f32 %v1906_v42, %v1759_v36  ;;  %v1926_v34 = vpop.f32.mrb[21].mxu1  ;;  %v900_v45 = vmul.f32 %v763_v0, %v763_v0 }
 0x10f   :  { %3013 = vst [vmem:[#allocation13_spill] sm:$0xff] %v1913_v60  ;;  %v825_v4 = vadd.f32 %v824_v58, %v761_v53  ;;  %v898_v6 = vmul.f32 %v761_v53, %v761_v53  ;;  %v960_v9 = vadd.f32 %v959_v50, %v897_v38  ;;  %v762_v11 = vsub.f32 %v1913_v60, %v1759_v36  ;;  %v1931_v42 = vpop.f32.mrb[22].mxu1 }
 0x111   :  { %v961_v14 = vadd.f32 %v960_v9, %v898_v6  ;;  %v826_v15 = vadd.f32 %v825_v4, %v762_v11  ;;  %v899_v20 = vmul.f32 %v762_v11, %v762_v11  ;;  %v1504_v23 = vpop.f32.mrb[24].mxu0  ;;  %v901_v4 = vmul.f32 %v764_v13, %v764_v13  ;;  %v1936_v11 = vpop.f32.mrb[23].mxu1 }
 0x112   :  { %v1924_v24 = vadd.f32 %v1504_v23, %v1759_v36  ;;  %v509_v26 = vpop.f32.mrb[25].mxu0 }
 0x113   :  { %v827_v38 = vadd.f32 %v826_v15, %v763_v0  ;;  %v962_v50 = vadd.f32 %v961_v14, %v899_v20  ;;  %v1929_v53 = vadd.f32 %v1759_v36, %v509_v26  ;;  %v1505_v58 = vpop.f32.mrb[26].mxu0 }
 0x114   :  { %3014 = vst [vmem:[#allocation14_spill] sm:$0xff] %v1924_v24  ;;  %v1934_v6 = vadd.f32 %v1505_v58, %v1759_v36  ;;  %v512_v9 = vpop.f32.mrb[27].mxu0  ;;  %v767_v14 = vsub.f32 %v1924_v24, %v1759_v36 }
 0x115   :  { %3015 = vst [vmem:[#allocation15_spill] sm:$0xff] %v1929_v53  ;;  %v963_v23 = vadd.f32 %v962_v50, %v900_v45  ;;  %v765_v17 = vsub.f32 %v1929_v53, %v1759_v36  ;;  %v828_v60 = vadd.f32 %v827_v38, %v764_v13  ;;  %v1941_v0 = vadd.f32 %v1759_v36, %v512_v9  ;;  %v1949_v13 = vpop.f32.mrb[24].mxu1 }
 0x116   :  { %3016 = vst [vmem:[#allocation16_spill] sm:$0xff] %v1934_v6  ;;  %v768_v32 = vsub.f32 %v1934_v6, %v1759_v36  ;;  %v1954_v24 = vpop.f32.mrb[25].mxu1 }
 0x117   :  { %3017 = vst [vmem:[#allocation17_spill] sm:$0xff] %v1941_v0  ;;  %v829_v15 = vadd.f32 %v828_v60, %v765_v17  ;;  %v902_v20 = vmul.f32 %v765_v17, %v765_v17  ;;  %v964_v26 = vadd.f32 %v963_v23, %v901_v4  ;;  %v766_v58 = vsub.f32 %v1941_v0, %v1759_v36  ;;  %v1959_v6 = vpop.f32.mrb[26].mxu1 }
 0x118   :  { %v904_v17 = vmul.f32 %v767_v14, %v767_v14 }
 0x119   :  { %v965_v45 = vadd.f32 %v964_v26, %v902_v20  ;;  %v830_v50 = vadd.f32 %v829_v15, %v766_v58  ;;  %v903_v47 = vmul.f32 %v766_v58, %v766_v58  ;;  %v1508_v53 = vpop.f32.mrb[28].mxu0  ;;  %v905_v15 = vmul.f32 %v768_v32, %v768_v32  ;;  %v1968_v58 = vpop.f32.mrb[27].mxu1 }
 0x11a   :  { %v1952_v38 = vadd.f32 %v1508_v53, %v1759_v36  ;;  %v525_v9 = vpop.f32.mrb[29].mxu0  ;;  %v1966_v53 = vadd.f32 %v1759_v36, %v1786_v57 }
 0x11b   :  { %v831_v60 = vadd.f32 %v830_v50, %v767_v14  ;;  %v966_v4 = vadd.f32 %v965_v45, %v903_v47  ;;  %v1957_v23 = vadd.f32 %v1759_v36, %v525_v9  ;;  %v1509_v0 = vpop.f32.mrb[30].mxu0 }
 0x11c   :  { %3018 = vst [vmem:[#allocation18_spill] sm:$0xff] %v1952_v38  ;;  %v1962_v20 = vadd.f32 %v1509_v0, %v1759_v36  ;;  %v528_v26 = vpop.f32.mrb[31].mxu0  ;;  %3021 = vst [vmem:[#allocation21_spill] sm:$0xff] %v1966_v53  ;;  %v771_v50 = vsub.f32 %v1952_v38, %v1759_v36  ;;  %v773_v39 = vsub.f32 %v1966_v53, %v1759_v36  ;;  %v1987_v38 = vpop.f32.mrb[28].mxu1 }
 0x11d   :  { %3019 = vst [vmem:[#allocation19_spill] sm:$0xff] %v1957_v23  ;;  %v967_v30 = vadd.f32 %v966_v4, %v904_v17  ;;  %v769_v47 = vsub.f32 %v1957_v23, %v1759_v36  ;;  %v832_v14 = vadd.f32 %v831_v60, %v768_v32  ;;  %v1973_v45 = vadd.f32 %v1759_v36, %v528_v26 }
 0x11e   :  { %3020 = vst [vmem:[#allocation20_spill] sm:$0xff] %v1962_v20  ;;  %v1983_v17 = vadd.f32 %v1759_v36, %v1796_v3  ;;  %v772_v60 = vsub.f32 %v1962_v20, %v1759_v36  ;;  %v1993_v53 = vadd.f32 %v1781_v54, %v1759_v36  ;;  %v910_v3 = vmul.f32 %v773_v39, %v773_v39 }
 0x11f   :  { %3022 = vst [vmem:[#allocation22_spill] sm:$0xff] %v1973_v45  ;;  %v833_v0 = vadd.f32 %v832_v14, %v769_v47  ;;  %v906_v9 = vmul.f32 %v769_v47, %v769_v47  ;;  %v968_v59 = vadd.f32 %v967_v30, %v905_v15  ;;  %v770_v57 = vsub.f32 %v1973_v45, %v1759_v36  ;;  %v1989_v47 = vpop.f32.mrb[29].mxu1 }
 0x120   :  { %3023 = vst [vmem:[#allocation23_spill] sm:$0xff] %v1983_v17  ;;  %v908_v30 = vmul.f32 %v771_v50, %v771_v50  ;;  %v1995_v45 = vpop.f32.mrb[30].mxu1  ;;  %v775_v54 = vsub.f32 %v1993_v53, %v1759_v36 }
 0x121   :  { %v969_v32 = vadd.f32 %v968_v59, %v906_v9  ;;  %v834_v4 = vadd.f32 %v833_v0, %v770_v57  ;;  %v907_v26 = vmul.f32 %v770_v57, %v770_v57  ;;  %v1999_v59 = vadd.f32 %v1791_v63, %v1759_v36  ;;  %v2003_v9 = vpop.f32.mrb[31].mxu1 }
 0x122   :  { %v774_v0 = vsub.f32 %v1983_v17, %v1759_v36  ;;  %v909_v57 = vmul.f32 %v772_v60, %v772_v60 }
 0x123   :  { %v835_v15 = vadd.f32 %v834_v4, %v771_v50  ;;  %v970_v14 = vadd.f32 %v969_v32, %v907_v26  ;;  %v2007_v32 = vadd.f32 %v1759_v36, %v1814_v21  ;;  %v776_v63 = vsub.f32 %v1999_v59, %v1759_v36 }
 0x124   :  { %v911_v23 = vmul.f32 %v774_v0, %v774_v0  ;;  %v912_v21 = vmul.f32 %v775_v54, %v775_v54 }
 0x125   :  { %v971_v20 = vadd.f32 %v970_v14, %v908_v30  ;;  %v836_v50 = vadd.f32 %v835_v15, %v772_v60  ;;  %v777_v52 = vsub.f32 %v2007_v32, %v1759_v36  ;;  %v2017_v60 = vadd.f32 %v1759_v36, %v1824_v31 }
 0x126   :  { %v2025_v14 = vadd.f32 %v1819_v27, %v1759_v36 }
 0x127   :  { %v837_v4 = vadd.f32 %v836_v50, %v773_v39  ;;  %v972_v26 = vadd.f32 %v971_v20, %v909_v57  ;;  %v2021_v39 = vadd.f32 %v1809_v18, %v1759_v36  ;;  %v913_v20 = vmul.f32 %v776_v63, %v776_v63 }
 0x128   :  { %v914_v31 = vmul.f32 %v777_v52, %v777_v52  ;;  %v780_v50 = vsub.f32 %v2025_v14, %v1759_v36 }
 0x129   :  { %v973_v5 = vadd.f32 %v972_v26, %v910_v3  ;;  %v838_v17 = vadd.f32 %v837_v4, %v774_v0  ;;  %v2029_v3 = vadd.f32 %v1759_v36, %v1842_v56  ;;  %v2041_v26 = vadd.f32 %v1759_v36, %v1852_v8 }
 0x12a   :  { %v2055_v8 = vadd.f32 %v1759_v36, %v1870_v33 }
 0x12b   :  { %v839_v30 = vadd.f32 %v838_v17, %v775_v54  ;;  %v974_v15 = vadd.f32 %v973_v5, %v911_v23  ;;  %v778_v17 = vsub.f32 %v2017_v60, %v1759_v36  ;;  %v779_v5 = vsub.f32 %v2021_v39, %v1759_v36 }
 0x12c   :  { %v781_v27 = vsub.f32 %v2029_v3, %v1759_v36 }
 0x12d   :  { %v975_v0 = vadd.f32 %v974_v15, %v912_v21  ;;  %v840_v57 = vadd.f32 %v839_v30, %v776_v63  ;;  %v915_v4 = vmul.f32 %v778_v17, %v778_v17  ;;  %v916_v63 = vmul.f32 %v779_v5, %v779_v5 }
 0x12e   :  { %v917_v15 = vmul.f32 %v780_v50, %v780_v50 }
 0x12f   :  { %v841_v18 = vadd.f32 %v840_v57, %v777_v52  ;;  %v976_v23 = vadd.f32 %v975_v0, %v913_v20  ;;  %v2045_v52 = vadd.f32 %v1837_v51, %v1759_v36  ;;  %v918_v20 = vmul.f32 %v781_v27, %v781_v27 }
 0x130   :  { %v2049_v0 = vadd.f32 %v1847_v2, %v1759_v36  ;;  %v2063_v2 = vadd.f32 %v1759_v36, %v1880_v49 }
 0x131   :  { %v977_v54 = vadd.f32 %v976_v23, %v914_v31  ;;  %v842_v56 = vadd.f32 %v841_v18, %v778_v17  ;;  %v782_v17 = vsub.f32 %v2041_v26, %v1759_v36 }
 0x132   :  { %v784_v23 = vsub.f32 %v2049_v0, %v1759_v36  ;;  %v786_v49 = vsub.f32 %v2063_v2, %v1759_v36 }
 0x133   :  { %v843_v21 = vadd.f32 %v842_v56, %v779_v5  ;;  %v978_v30 = vadd.f32 %v977_v54, %v915_v4  ;;  %v783_v5 = vsub.f32 %v2045_v52, %v1759_v36  ;;  %v919_v56 = vmul.f32 %v782_v17, %v782_v17 }
 0x134   :  { %v785_v4 = vsub.f32 %v2055_v8, %v1759_v36 }
 0x135   :  { %v979_v57 = vadd.f32 %v978_v30, %v916_v63  ;;  %v844_v31 = vadd.f32 %v843_v21, %v780_v50  ;;  %v920_v33 = vmul.f32 %v783_v5, %v783_v5  ;;  %v921_v30 = vmul.f32 %v784_v23, %v784_v23 }
 0x137   :  { %v845_v51 = vadd.f32 %v844_v31, %v781_v27  ;;  %v980_v18 = vadd.f32 %v979_v57, %v917_v15  ;;  %v2069_v27 = vadd.f32 %v1865_v28, %v1759_v36  ;;  %v2073_v15 = vadd.f32 %v1875_v44, %v1759_v36 }
 0x138   :  { %v922_v31 = vmul.f32 %v785_v4, %v785_v4  ;;  %v2087_v44 = vadd.f32 %v1759_v36, %v1908_v48 }
 0x139   :  { %v981_v50 = vadd.f32 %v980_v18, %v918_v20  ;;  %v846_v54 = vadd.f32 %v845_v51, %v782_v17  ;;  %v2079_v17 = vadd.f32 %v1759_v36, %v1898_v22  ;;  %v788_v18 = vsub.f32 %v2073_v15, %v1759_v36 }
 0x13a   :  { %v790_v48 = vsub.f32 %v2087_v44, %v1759_v36 }
 0x13b   :  { %v847_v63 = vadd.f32 %v846_v54, %v783_v5  ;;  %v982_v21 = vadd.f32 %v981_v50, %v919_v56  ;;  %v787_v5 = vsub.f32 %v2069_v27, %v1759_v36  ;;  %v789_v56 = vsub.f32 %v2079_v17, %v1759_v36 }
 0x13d   :  { %v983_v20 = vadd.f32 %v982_v21, %v920_v33  ;;  %v848_v57 = vadd.f32 %v847_v63, %v784_v23  ;;  %v923_v23 = vmul.f32 %v786_v49, %v786_v49  ;;  %v924_v22 = vmul.f32 %v787_v5, %v787_v5 }
 0x13e   :  { %v925_v21 = vmul.f32 %v788_v18, %v788_v18 }
 0x13f   :  { %v849_v28 = vadd.f32 %v848_v57, %v785_v4  ;;  %v984_v51 = vadd.f32 %v983_v20, %v921_v30  ;;  %v2093_v4 = vadd.f32 %v1893_v16, %v1759_v36  ;;  %v2097_v30 = vadd.f32 %v1903_v37, %v1759_v36 }
 0x140   :  { %v926_v57 = vmul.f32 %v789_v56, %v789_v56  ;;  %v2111_v37 = vadd.f32 %v1759_v36, %v1936_v11 }
 0x141   :  { %v985_v50 = vadd.f32 %v984_v51, %v922_v31  ;;  %v850_v54 = vadd.f32 %v849_v28, %v786_v49  ;;  %v2103_v31 = vadd.f32 %v1759_v36, %v1926_v34  ;;  %v792_v51 = vsub.f32 %v2097_v30, %v1759_v36 }
 0x142   :  { %v794_v11 = vsub.f32 %v2111_v37, %v1759_v36 }
 0x143   :  { %v851_v33 = vadd.f32 %v850_v54, %v787_v5  ;;  %v986_v63 = vadd.f32 %v985_v50, %v923_v23  ;;  %v791_v5 = vsub.f32 %v2093_v4, %v1759_v36  ;;  %v793_v23 = vsub.f32 %v2103_v31, %v1759_v36 }
 0x145   :  { %v987_v20 = vadd.f32 %v986_v63, %v924_v22  ;;  %v852_v49 = vadd.f32 %v851_v33, %v788_v18  ;;  %v927_v18 = vmul.f32 %v790_v48, %v790_v48  ;;  %v928_v34 = vmul.f32 %v791_v5, %v791_v5 }
 0x146   :  { %v929_v63 = vmul.f32 %v792_v51, %v792_v51 }
 0x147   :  { %v853_v16 = vadd.f32 %v852_v49, %v789_v56  ;;  %v988_v28 = vadd.f32 %v987_v20, %v925_v21  ;;  %v2117_v56 = vadd.f32 %v1921_v10, %v1759_v36  ;;  %v2121_v21 = vadd.f32 %v1931_v42, %v1759_v36 }
 0x148   :  { %v930_v49 = vmul.f32 %v793_v23, %v793_v23  ;;  %v2135_v42 = vadd.f32 %v1759_v36, %v1968_v58 }
 0x149   :  { %v989_v50 = vadd.f32 %v988_v28, %v926_v57  ;;  %v854_v54 = vadd.f32 %v853_v16, %v790_v48  ;;  %v2127_v57 = vadd.f32 %v1759_v36, %v1954_v24  ;;  %v796_v28 = vsub.f32 %v2121_v21, %v1759_v36 }
 0x14a   :  { %3024 = vst [vmem:[#allocation24_spill] sm:$0xff] %v2135_v42  ;;  %v798_v58 = vsub.f32 %v2135_v42, %v1759_v36 }
 0x14b   :  { %v855_v22 = vadd.f32 %v854_v54, %v791_v5  ;;  %v990_v33 = vadd.f32 %v989_v50, %v927_v18  ;;  %v795_v5 = vsub.f32 %v2117_v56, %v1759_v36  ;;  %v797_v18 = vsub.f32 %v2127_v57, %v1759_v36 }
 0x14d   :  { %v991_v20 = vadd.f32 %v990_v33, %v928_v34  ;;  %v856_v48 = vadd.f32 %v855_v22, %v792_v51  ;;  %v931_v51 = vmul.f32 %v794_v11, %v794_v11  ;;  %v932_v24 = vmul.f32 %v795_v5, %v795_v5 }
 0x14e   :  { %v933_v33 = vmul.f32 %v796_v28, %v796_v28 }
 0x14f   :  { %v857_v10 = vadd.f32 %v856_v48, %v793_v23  ;;  %v992_v16 = vadd.f32 %v991_v20, %v929_v63  ;;  %v2141_v23 = vadd.f32 %v1949_v13, %v1759_v36  ;;  %v2145_v63 = vadd.f32 %v1959_v6, %v1759_v36 }
 0x150   :  { %v934_v48 = vmul.f32 %v797_v18, %v797_v18  ;;  %v935_v6 = vmul.f32 %v798_v58, %v798_v58 }
 0x151   :  { %v993_v50 = vadd.f32 %v992_v16, %v930_v49  ;;  %v858_v54 = vadd.f32 %v857_v10, %v794_v11  ;;  %3025 = vst [vmem:[#allocation25_spill] sm:$0xff] %v2141_v23  ;;  %3026 = vst [vmem:[#allocation26_spill] sm:$0xff] %v2145_v63  ;;  %v2151_v49 = vadd.f32 %v1759_v36, %v1989_v47 }
 0x152   :  { %v800_v16 = vsub.f32 %v2145_v63, %v1759_v36 }
 0x153   :  { %v859_v34 = vadd.f32 %v858_v54, %v795_v5  ;;  %v994_v22 = vadd.f32 %v993_v50, %v931_v51  ;;  %3027 = vst [vmem:[#allocation27_spill] sm:$0xff] %v2151_v49  ;;  %v799_v5 = vsub.f32 %v2141_v23, %v1759_v36  ;;  %v801_v51 = vsub.f32 %v2151_v49, %v1759_v36 }
 0x155   :  { %v995_v20 = vadd.f32 %v994_v22, %v932_v24  ;;  %v860_v11 = vadd.f32 %v859_v34, %v796_v28  ;;  %v2161_v28 = vadd.f32 %v1759_v36, %v2003_v9  ;;  %v936_v47 = vmul.f32 %v799_v5, %v799_v5 }
 0x156   :  { %v937_v22 = vmul.f32 %v800_v16, %v800_v16 }
 0x157   :  { %v861_v13 = vadd.f32 %v860_v11, %v797_v18  ;;  %v996_v10 = vadd.f32 %v995_v20, %v933_v33  ;;  %3028 = vst [vmem:[#allocation28_spill] sm:$0xff] %v2161_v28  ;;  %v2165_v18 = vadd.f32 %v1987_v38, %v1759_v36  ;;  %v2169_v33 = vadd.f32 %v1995_v45, %v1759_v36 }
 0x158   :  { %v938_v11 = vmul.f32 %v801_v51, %v801_v51 }
 0x159   :  { %v997_v50 = vadd.f32 %v996_v10, %v934_v48  ;;  %v862_v54 = vadd.f32 %v861_v13, %v798_v58  ;;  %3029 = vst [vmem:[#allocation29_spill] sm:$0xff] %v2165_v18  ;;  %v802_v48 = vsub.f32 %v2161_v28, %v1759_v36  ;;  %v803_v9 = vsub.f32 %v2165_v18, %v1759_v36 }
 0x15a   :  { %v804_v38 = vsub.f32 %v2169_v33, %v1759_v36 }
 0x15b   :  { %v863_v24 = vadd.f32 %v862_v54, %v799_v5  ;;  %v998_v34 = vadd.f32 %v997_v50, %v935_v6  ;;  %v939_v50 = vmul.f32 %v802_v48, %v802_v48  ;;  %v940_v54 = vmul.f32 %v803_v9, %v803_v9 }
 0x15d   :  { %v999_v58 = vadd.f32 %v998_v34, %v936_v47  ;;  %v864_v20 = vadd.f32 %v863_v24, %v800_v16  ;;  %v941_v47 = vmul.f32 %v804_v38, %v804_v38 }
 0x15f   :  { %v865_v5 = vadd.f32 %v864_v20, %v801_v51  ;;  %v1000_v13 = vadd.f32 %v999_v58, %v937_v22 }
 0x161   :  { %v1001_v10 = vadd.f32 %v1000_v13, %v938_v11  ;;  %v866_v6 = vadd.f32 %v865_v5, %v802_v48  ;;  %v805_v11 = vld [vmem:[#allocation2] sm:$0x1]  ;;  %v877_v48 = vld [vmem:[#allocation3] sm:$0x1] }
 0x163   :  { %v867_v45 = vadd.f32 %v866_v6, %v803_v9  ;;  %v1002_v49 = vadd.f32 %v1001_v10, %v939_v50 }
 0x165   :  { %v868_v16 = vadd.f32 %v867_v45, %v804_v38  ;;  %v1003_v24 = vadd.f32 %v1002_v49, %v940_v54 }
 0x167   :  { %v869_v34 = vrot.slane %v868_v16, 4  ;;  %v1004_v63 = vadd.f32 %v1003_v24, %v941_v47  ;;  %v1028_v47 = vld [vmem:[%s2973_s2] sm:$0x1] }
 0x169   :  { %v870_v28 = vadd.f32 %v869_v34, %v868_v16  ;;  %v1005_v23 = vrot.slane %v1004_v63, 4 }
 0x16b   :  { %v871_v42 = vrot.slane %v870_v28, 2  ;;  %v1006_v18 = vadd.f32 %v1005_v23, %v1004_v63  ;;  %v1097_v63 = vlaneseq }
 0x16d   :  { %v872_v51 = vadd.f32 %v871_v42, %v870_v28  ;;  %v1007_v22 = vrot.slane %v1006_v18, 2  ;;  %v2177_v28 = vshrl.u32 %v1097_v63, 7  ;;  %v3037_v63 = vld [vmem:[#allocation13_spill] sm:$0xff] }
 0x16f   :  { %v873_v58 = vrot.slane %v872_v51, 1  ;;  %v1008_v20 = vadd.f32 %v1007_v22, %v1006_v18  ;;  %v1023_v18 = vld [vmem:[%s2974_s3] sm:$0x1]  ;;  %v3003_v16 = vsub.s32 0, %v2177_v28 }
 0x170   :  { %v2189_v22 = vld [vmem:[%s2975_s4] sm:$0x1] }
 0x171   :  { %v874_v36 = vadd.f32 %v873_v58, %v872_v51  ;;  %v1009_v5 = vrot.slane %v1008_v20, 1 }
 0x173   :  { %v875_v13 = vadd.f32 %v874_v36, %v805_v11  ;;  %v1010_v9 = vadd.f32 %v1009_v5, %v1008_v20 }
 0x175   :  { %876 = vst [vmem:[#allocation2] sm:$0x1] %v875_v13  ;;  %v1011_v10 = vadd.f32 %v1010_v9, %v877_v48 }
 0x177   :  { %1012 = vst [vmem:[#allocation3] sm:$0x1] %v1011_v10  ;;  %v3030_v10 = vld [vmem:[#allocation4_spill] sm:$0xff] }
 0x17c   :  { %v1016_v49 = vld [vmem:[#allocation2] sm:$0x1] }
 0x17d   :  { %v1017_v38 = vmul.f32 0.001953125, %v1016_v49  ;;  %v3031_v49 = vld [vmem:[#allocation5_spill] sm:$0xff] }
 0x17e   :  { %v1018_v6 = vld [vmem:[#allocation3] sm:$0x1] }
 0x17f   :  { %v1019_v50 = vmul.f32 0.001953125, %v1018_v6  ;;  %v1020_v54 = vmul.f32 %v1017_v38, %v1017_v38  ;;  %v1029_v51 = vadd.f32 %v1028_v47, %v1017_v38  ;;  %v3032_v38 = vld [vmem:[#allocation7_spill] sm:$0xff]  ;;  %v3033_v6 = vld [vmem:[#allocation9_spill] sm:$0xff]  ;;  %v3038_v47 = vld [vmem:[#allocation10_spill] sm:$0xff] }
 0x181   :  { %v1021_v45 = vsub.f32 %v1019_v50, %v1020_v54  ;;  %v3034_v50 = vld [vmem:[#allocation6_spill] sm:$0xff]  ;;  %v3035_v54 = vld [vmem:[#allocation8_spill] sm:$0xff] }
 0x183   :  { %v1022_v23 = vmax.f32 %v1021_v45, 0.0 }
 0x185   :  { %v1024_v42 = vadd.f32 1e-05, %v1022_v23  ;;  %v3036_v23 = vld [vmem:[#allocation11_spill] sm:$0xff] }
 0x187   :  { %1586 = vrsqrt.f32 %v1024_v42 }
 0x191   :  { %v1587_v24 = vpop.eup %1586 }
 0x192   :  { %v1026_v34 = vmul.f32 %v1587_v24, %v1023_v18 }
 0x194   :  { %v2191_v58 = vmul.f32 %v1029_v51, %v1026_v34  ;;  %v2195_v20 = vrot.slane %v1026_v34, %v3003_v16  ;;  %v3039_v34 = vld [vmem:[#allocation12_spill] sm:$0xff] }
 0x195   :  { %v3049_v16 = vld [vmem:[#allocation20_spill] sm:$0xff] }
 0x196   :  { %v1031_v11 = vsub.f32 %v2189_v22, %v2191_v58  ;;  %v2201_v36 = vmul.f32 %v2195_v20, %v1765_v41  ;;  %v2205_v5 = vmul.f32 %v2195_v20, %v1773_v46  ;;  %v2209_v48 = vmul.f32 %v2195_v20, %v1762_v40  ;;  %v3040_v22 = vld [vmem:[#allocation15_spill] sm:$0xff] }
 0x197   :  { %v2213_v13 = vmul.f32 %v2195_v20, %v1768_v43  ;;  %v2217_v9 = vmul.f32 %v2195_v20, %v1789_v61  ;;  %v2221_v41 = vmul.f32 %v2195_v20, %v1801_v7  ;;  %v2225_v46 = vmul.f32 %v2195_v20, %v1784_v55 }
 0x198   :  { %v2229_v40 = vmul.f32 %v2195_v20, %v1794_v1  ;;  %v2233_v43 = vmul.f32 %v2195_v20, %v1817_v25  ;;  %v2237_v61 = vmul.f32 %v2195_v20, %v1829_v35  ;;  %v2241_v7 = vmul.f32 %v2195_v20, %v1812_v19 }
 0x199   :  { %v2245_v55 = vmul.f32 %v2195_v20, %v1822_v29  ;;  %v2249_v1 = vmul.f32 %v2195_v20, %v1845_v62  ;;  %v2253_v25 = vmul.f32 %v2195_v20, %v1857_v12  ;;  %v2257_v35 = vmul.f32 %v2195_v20, %v3030_v10  ;;  %v3041_v10 = vld [vmem:[#allocation17_spill] sm:$0xff] }
 0x19a   :  { %v2261_v19 = vmul.f32 %v2195_v20, %v3031_v49  ;;  %v2265_v29 = vmul.f32 %v2195_v20, %v3032_v38  ;;  %v2269_v62 = vmul.f32 %v2195_v20, %v3033_v6  ;;  %v2273_v12 = vmul.f32 %v2195_v20, %v3034_v50  ;;  %v3042_v38 = vld [vmem:[#allocation14_spill] sm:$0xff]  ;;  %v3044_v50 = vld [vmem:[#allocation16_spill] sm:$0xff] }
 0x19b   :  { %v2277_v45 = vmul.f32 %v2195_v20, %v3035_v54  ;;  %v2281_v42 = vmul.f32 %v2195_v20, %v3036_v23  ;;  %v2285_v18 = vmul.f32 %v2195_v20, %v3037_v63  ;;  %v2289_v24 = vmul.f32 %v2195_v20, %v3038_v47  ;;  %v3046_v23 = vld [vmem:[#allocation19_spill] sm:$0xff]  ;;  %v3047_v47 = vld [vmem:[#allocation22_spill] sm:$0xff] }
 0x19c   :  { %v2293_v51 = vmul.f32 %v2195_v20, %v3039_v34  ;;  %v2297_v58 = vmul.f32 %v2195_v20, %v3040_v22  ;;  %v2301_v49 = vmul.f32 %v2195_v20, %v3041_v10  ;;  %v2305_v6 = vmul.f32 %v2195_v20, %v3042_v38  ;;  %v3048_v22 = vld [vmem:[#allocation18_spill] sm:$0xff] }
 0x19d   :  { %v2309_v54 = vmul.f32 %v2195_v20, %v3044_v50  ;;  %v2313_v63 = vmul.f32 %v2195_v20, %v3046_v23  ;;  %v2317_v34 = vmul.f32 %v2195_v20, %v3047_v47  ;;  %v2321_v10 = vmul.f32 %v2195_v20, %v3048_v22 }
 0x19e   :  { %3043 = vst [vmem:[#allocation4_spill] sm:$0xff] %v2305_v6  ;;  %v2325_v38 = vmul.f32 %v2195_v20, %v3049_v16  ;;  %v3050_v6 = vld [vmem:[#allocation21_spill] sm:$0xff]  ;;  %v2337_v47 = vmul.f32 %v2195_v20, %v1993_v53  ;;  %v2341_v22 = vmul.f32 %v2195_v20, %v1999_v59  ;;  %v2345_v16 = vmul.f32 %v2195_v20, %v2007_v32 }
 0x19f   :  { %3045 = vst [vmem:[#allocation5_spill] sm:$0xff] %v2309_v54  ;;  %v2329_v50 = vmul.f32 %v2195_v20, %v3050_v6  ;;  %v3051_v54 = vld [vmem:[#allocation23_spill] sm:$0xff]  ;;  %v2349_v6 = vmul.f32 %v2195_v20, %v2017_v60  ;;  %v2357_v53 = vmul.f32 %v2195_v20, %v2025_v14  ;;  %v2361_v59 = vmul.f32 %v2195_v20, %v2029_v3 }
 0x1a0   :  { %v2333_v23 = vmul.f32 %v2195_v20, %v3051_v54  ;;  %v2353_v54 = vmul.f32 %v2195_v20, %v2021_v39  ;;  %v2365_v32 = vmul.f32 %v2195_v20, %v2041_v26  ;;  %v2369_v60 = vmul.f32 %v2195_v20, %v2045_v52 }
 0x1a1   :  { %v2373_v39 = vmul.f32 %v2195_v20, %v2049_v0  ;;  %v2377_v14 = vmul.f32 %v2195_v20, %v2055_v8  ;;  %v2381_v3 = vmul.f32 %v2195_v20, %v2063_v2  ;;  %v2385_v26 = vmul.f32 %v2195_v20, %v2069_v27 }
 0x1a2   :  { %v2389_v52 = vmul.f32 %v2195_v20, %v2073_v15  ;;  %v2393_v0 = vmul.f32 %v2195_v20, %v2079_v17  ;;  %v2397_v8 = vmul.f32 %v2195_v20, %v2087_v44  ;;  %v2401_v2 = vmul.f32 %v2195_v20, %v2093_v4 }
 0x1a3   :  { %v2405_v27 = vmul.f32 %v2195_v20, %v2097_v30  ;;  %v2409_v15 = vmul.f32 %v2195_v20, %v2103_v31  ;;  %v2413_v17 = vmul.f32 %v2195_v20, %v2111_v37  ;;  %v2417_v44 = vmul.f32 %v2195_v20, %v2117_v56 }
 0x1a4   :  { %v2421_v4 = vmul.f32 %v2195_v20, %v2121_v21  ;;  %v2425_v30 = vmul.f32 %v2195_v20, %v2127_v57 }
 0x1a5   :  { %3052 = vst [vmem:[#allocation7_spill] sm:$0xff] %v2405_v27  ;;  %3053 = vst [vmem:[#allocation9_spill] sm:$0xff] %v2409_v15  ;;  %v3058_v27 = vld [vmem:[#allocation24_spill] sm:$0xff]  ;;  %v3060_v15 = vld [vmem:[#allocation25_spill] sm:$0xff] }
 0x1a6   :  { %3054 = vst [vmem:[#allocation6_spill] sm:$0xff] %v2413_v17  ;;  %3055 = vst [vmem:[#allocation8_spill] sm:$0xff] %v2417_v44  ;;  %v2429_v31 = vmul.f32 %v2195_v20, %v3058_v27  ;;  %v2433_v37 = vmul.f32 %v2195_v20, %v3060_v15  ;;  %v3061_v17 = vld [vmem:[#allocation26_spill] sm:$0xff]  ;;  %v3062_v44 = vsub.s32 0, %v2177_v28 }
 0x1a7   :  { %3056 = vst [vmem:[#allocation11_spill] sm:$0xff] %v2421_v4  ;;  %3057 = vst [vmem:[#allocation13_spill] sm:$0xff] %v2425_v30  ;;  %v2437_v56 = vmul.f32 %v2195_v20, %v3061_v17  ;;  %v3063_v4 = vld [vmem:[#allocation27_spill] sm:$0xff]  ;;  %v3064_v30 = vld [vmem:[#allocation28_spill] sm:$0xff]  ;;  %v2457_v17 = vmul.f32 %v2195_v20, %v2169_v33 }
 0x1a8   :  { %3059 = vst [vmem:[#allocation10_spill] sm:$0xff] %v2429_v31  ;;  %v2441_v21 = vrot.slane %v1031_v11, %v3062_v44  ;;  %v2445_v57 = vmul.f32 %v2195_v20, %v3063_v4  ;;  %v2449_v27 = vmul.f32 %v2195_v20, %v3064_v30  ;;  %v3065_v31 = vld [vmem:[#allocation29_spill] sm:$0xff] }
 0x1a9   :  { %v2453_v15 = vmul.f32 %v2195_v20, %v3065_v31  ;;  %v3067_v30 = vld [vmem:[#allocation5_spill] sm:$0xff] }
 0x1aa   :  { %v2461_v28 = vadd.f32 %v2441_v21, %v2201_v36  ;;  %v2465_v11 = vadd.f32 %v2441_v21, %v2205_v5  ;;  %v2469_v44 = vadd.f32 %v2441_v21, %v2209_v48  ;;  %v2473_v4 = vadd.f32 %v2441_v21, %v2213_v13 }
 0x1ab   :  { %v2477_v33 = vadd.f32 %v2441_v21, %v2217_v9  ;;  %v2481_v20 = vadd.f32 %v2441_v21, %v2221_v41  ;;  %v2485_v36 = vadd.f32 %v2441_v21, %v2225_v46  ;;  %v2489_v5 = vadd.f32 %v2441_v21, %v2229_v40 }
 0x1ac   :  { %v2493_v48 = vadd.f32 %v2441_v21, %v2233_v43  ;;  %v2497_v13 = vadd.f32 %v2441_v21, %v2237_v61  ;;  %v2501_v9 = vadd.f32 %v2441_v21, %v2241_v7  ;;  %v2505_v41 = vadd.f32 %v2441_v21, %v2245_v55 }
 0x1ad   :  { %v2509_v46 = vadd.f32 %v2441_v21, %v2249_v1  ;;  %v2513_v40 = vadd.f32 %v2441_v21, %v2253_v25  ;;  %v2517_v43 = vadd.f32 %v2441_v21, %v2257_v35  ;;  %v2521_v61 = vadd.f32 %v2441_v21, %v2261_v19 }
 0x1ae   :  { %v2525_v7 = vadd.f32 %v2441_v21, %v2265_v29  ;;  %v2529_v55 = vadd.f32 %v2441_v21, %v2269_v62  ;;  %v2533_v1 = vadd.f32 %v2441_v21, %v2273_v12  ;;  %v2537_v25 = vadd.f32 %v2441_v21, %v2277_v45 }
 0x1af   :  { %v2541_v35 = vadd.f32 %v2441_v21, %v2281_v42  ;;  %v2545_v19 = vadd.f32 %v2441_v21, %v2285_v18  ;;  %v2549_v29 = vadd.f32 %v2441_v21, %v2289_v24  ;;  %v2553_v62 = vadd.f32 %v2441_v21, %v2293_v51  ;;  %v3066_v42 = vld [vmem:[#allocation4_spill] sm:$0xff] }
 0x1b0   :  { %v2557_v12 = vadd.f32 %v2441_v21, %v2297_v58  ;;  %v2561_v45 = vadd.f32 %v2441_v21, %v2301_v49  ;;  %v2565_v18 = vadd.f32 %v2441_v21, %v3066_v42  ;;  %v2569_v24 = vadd.f32 %v2441_v21, %v3067_v30  ;;  %v3073_v30 = vld [vmem:[#allocation7_spill] sm:$0xff] }
 0x1b1   :  { %v2573_v51 = vadd.f32 %v2441_v21, %v2313_v63  ;;  %v2577_v58 = vadd.f32 %v2441_v21, %v2317_v34  ;;  %v2581_v49 = vadd.f32 %v2441_v21, %v2321_v10  ;;  %v2585_v31 = vadd.f32 %v2441_v21, %v2325_v38 }
 0x1b2   :  { %v2589_v42 = vadd.f32 %v2441_v21, %v2329_v50  ;;  %v2593_v63 = vadd.f32 %v2441_v21, %v2333_v23  ;;  %v2597_v34 = vadd.f32 %v2441_v21, %v2337_v47  ;;  %v2601_v10 = vadd.f32 %v2441_v21, %v2341_v22 }
 0x1b3   :  { %v2605_v38 = vadd.f32 %v2441_v21, %v2345_v16  ;;  %v2609_v50 = vadd.f32 %v2441_v21, %v2349_v6  ;;  %v2613_v23 = vadd.f32 %v2441_v21, %v2353_v54  ;;  %v2617_v47 = vadd.f32 %v2441_v21, %v2357_v53 }
 0x1b4   :  { %v2621_v22 = vadd.f32 %v2441_v21, %v2361_v59  ;;  %v2625_v16 = vadd.f32 %v2441_v21, %v2365_v32  ;;  %v2629_v6 = vadd.f32 %v2441_v21, %v2369_v60  ;;  %v2633_v54 = vadd.f32 %v2441_v21, %v2373_v39 }
 0x1b5   :  { %v2637_v53 = vadd.f32 %v2441_v21, %v2377_v14  ;;  %v2641_v59 = vadd.f32 %v2441_v21, %v2381_v3  ;;  %v2645_v32 = vadd.f32 %v2441_v21, %v2385_v26  ;;  %v2649_v60 = vadd.f32 %v2441_v21, %v2389_v52 }
 0x1b6   :  { %v2653_v39 = vadd.f32 %v2441_v21, %v2393_v0  ;;  %v2657_v14 = vadd.f32 %v2441_v21, %v2397_v8  ;;  %v2661_v3 = vadd.f32 %v2441_v21, %v2401_v2  ;;  %v2665_v26 = vadd.f32 %v2441_v21, %v3073_v30 }
 0x1b7   :  { %3068 = vst [vmem:[#allocation12_spill] sm:$0xff] %v2645_v32  ;;  %3069 = vst [vmem:[#allocation15_spill] sm:$0xff] %v2649_v60  ;;  %v3075_v32 = vld [vmem:[#allocation9_spill] sm:$0xff]  ;;  %v3076_v60 = vld [vmem:[#allocation6_spill] sm:$0xff] }
 0x1b8   :  { %3070 = vst [vmem:[#allocation17_spill] sm:$0xff] %v2653_v39  ;;  %3071 = vst [vmem:[#allocation14_spill] sm:$0xff] %v2657_v14  ;;  %v2669_v52 = vadd.f32 %v2441_v21, %v3075_v32  ;;  %v2673_v0 = vadd.f32 %v2441_v21, %v3076_v60  ;;  %v3077_v39 = vld [vmem:[#allocation8_spill] sm:$0xff]  ;;  %v3078_v14 = vld [vmem:[#allocation11_spill] sm:$0xff]  ;;  %v2693_v60 = vadd.f32 %v2441_v21, %v2433_v37 }
 0x1b9   :  { %3072 = vst [vmem:[#allocation16_spill] sm:$0xff] %v2661_v3  ;;  %3074 = vst [vmem:[#allocation19_spill] sm:$0xff] %v2665_v26  ;;  %v2677_v8 = vadd.f32 %v2441_v21, %v3077_v39  ;;  %v2681_v2 = vadd.f32 %v2441_v21, %v3078_v14  ;;  %v3079_v3 = vld [vmem:[#allocation13_spill] sm:$0xff]  ;;  %v3080_v26 = vld [vmem:[#allocation10_spill] sm:$0xff]  ;;  %v2697_v39 = vadd.f32 %v2441_v21, %v2437_v56  ;;  %v1237_v56 = vmax.f32 %v2465_v11, 0.0 }
 0x1ba   :  { %v2685_v30 = vadd.f32 %v2441_v21, %v3079_v3  ;;  %v2689_v32 = vadd.f32 %v2441_v21, %v3080_v26  ;;  %3081 = vst [vmem:[#allocation22_spill] sm:$0xff] %v2693_v60  ;;  %v2701_v14 = vadd.f32 %v2441_v21, %v2445_v57  ;;  %v2705_v3 = vadd.f32 %v2441_v21, %v2449_v27 }
 0x1bb   :  { %3082 = vst [vmem:[#allocation18_spill] sm:$0xff] %v2697_v39  ;;  %v2709_v26 = vadd.f32 %v2441_v21, %v2453_v15  ;;  %v2713_v37 = vadd.f32 %v2441_v21, %v2457_v17  ;;  %v1236_v60 = vmax.f32 %v2461_v28, 0.0  ;;  %v1238_v39 = vmax.f32 %v2469_v44, 0.0  ;;  %1301 = vst [vmem:[%s2976_s5 + $0x8] sm:$0xff] %v1237_v56 }
 0x1bc   :  { %3083 = vst [vmem:[#allocation20_spill] sm:$0xff] %v2701_v14  ;;  %3084 = vst [vmem:[#allocation21_spill] sm:$0xff] %v2705_v3  ;;  %v1239_v57 = vmax.f32 %v2473_v4, 0.0  ;;  %v1240_v14 = vmax.f32 %v2477_v33, 0.0  ;;  %v1241_v27 = vmax.f32 %v2481_v20, 0.0  ;;  %v1242_v3 = vmax.f32 %v2485_v36, 0.0 }
 0x1bd   :  { %3085 = vst [vmem:[#allocation23_spill] sm:$0xff] %v2709_v26  ;;  %v1243_v15 = vmax.f32 %v2489_v5, 0.0  ;;  %v1244_v26 = vmax.f32 %v2493_v48, 0.0  ;;  %v1245_v21 = vmax.f32 %v2497_v13, 0.0  ;;  %v1246_v17 = vmax.f32 %v2501_v9, 0.0  ;;  %1300 = vst [vmem:[%s2976_s5] sm:$0xff] %v1236_v60 }
 0x1be   :  { %v1247_v28 = vmax.f32 %v2505_v41, 0.0  ;;  %1302 = vst [vmem:[%s2976_s5 + $0x10] sm:$0xff] %v1238_v39  ;;  %1303 = vst [vmem:[%s2976_s5 + $0x18] sm:$0xff] %v1239_v57  ;;  %v1248_v11 = vmax.f32 %v2509_v46, 0.0  ;;  %v1249_v44 = vmax.f32 %v2513_v40, 0.0  ;;  %v1250_v4 = vmax.f32 %v2517_v43, 0.0 }
 0x1bf   :  { %v1251_v33 = vmax.f32 %v2521_v61, 0.0  ;;  %1304 = vst [vmem:[%s2976_s5 + $0x20] sm:$0xff] %v1240_v14  ;;  %1305 = vst [vmem:[%s2976_s5 + $0x28] sm:$0xff] %v1241_v27  ;;  %v1252_v20 = vmax.f32 %v2525_v7, 0.0  ;;  %v1253_v36 = vmax.f32 %v2529_v55, 0.0  ;;  %v1254_v5 = vmax.f32 %v2533_v1, 0.0 }
 0x1c0   :  { %1306 = vst [vmem:[%s2976_s5 + $0x30] sm:$0xff] %v1242_v3  ;;  %1307 = vst [vmem:[%s2976_s5 + $0x38] sm:$0xff] %v1243_v15  ;;  %v1255_v48 = vmax.f32 %v2537_v25, 0.0  ;;  %v1256_v13 = vmax.f32 %v2541_v35, 0.0  ;;  %v1257_v9 = vmax.f32 %v2545_v19, 0.0  ;;  %v1258_v41 = vmax.f32 %v2549_v29, 0.0 }
 0x1c1   :  { %1308 = vst [vmem:[%s2976_s5 + $0x40] sm:$0xff] %v1244_v26  ;;  %1309 = vst [vmem:[%s2976_s5 + $0x48] sm:$0xff] %v1245_v21  ;;  %v1259_v46 = vmax.f32 %v2553_v62, 0.0  ;;  %v1260_v40 = vmax.f32 %v2557_v12, 0.0  ;;  %v1261_v43 = vmax.f32 %v2561_v45, 0.0  ;;  %v1262_v61 = vmax.f32 %v2565_v18, 0.0 }
 0x1c2   :  { %1310 = vst [vmem:[%s2976_s5 + $0x50] sm:$0xff] %v1246_v17  ;;  %1311 = vst [vmem:[%s2976_s5 + $0x58] sm:$0xff] %v1247_v28  ;;  %v1263_v7 = vmax.f32 %v2569_v24, 0.0  ;;  %v1264_v55 = vmax.f32 %v2573_v51, 0.0  ;;  %v1265_v1 = vmax.f32 %v2577_v58, 0.0  ;;  %v1266_v25 = vmax.f32 %v2581_v49, 0.0 }
 0x1c3   :  { %1312 = vst [vmem:[%s2976_s5 + $0x60] sm:$0xff] %v1248_v11  ;;  %1313 = vst [vmem:[%s2976_s5 + $0x68] sm:$0xff] %v1249_v44  ;;  %v1267_v35 = vmax.f32 %v2585_v31, 0.0  ;;  %v1268_v19 = vmax.f32 %v2589_v42, 0.0  ;;  %v1269_v29 = vmax.f32 %v2593_v63, 0.0  ;;  %v1270_v62 = vmax.f32 %v2597_v34, 0.0 }
 0x1c4   :  { %1314 = vst [vmem:[%s2976_s5 + $0x70] sm:$0xff] %v1250_v4  ;;  %1315 = vst [vmem:[%s2976_s5 + $0x78] sm:$0xff] %v1251_v33  ;;  %v1271_v12 = vmax.f32 %v2601_v10, 0.0  ;;  %v1272_v45 = vmax.f32 %v2605_v38, 0.0  ;;  %v1273_v18 = vmax.f32 %v2609_v50, 0.0  ;;  %v1274_v24 = vmax.f32 %v2613_v23, 0.0 }
 0x1c5   :  { %1316 = vst [vmem:[%s2976_s5 + $0x80] sm:$0xff] %v1252_v20  ;;  %1317 = vst [vmem:[%s2976_s5 + $0x88] sm:$0xff] %v1253_v36  ;;  %v1275_v51 = vmax.f32 %v2617_v47, 0.0  ;;  %v1276_v58 = vmax.f32 %v2621_v22, 0.0  ;;  %v1277_v49 = vmax.f32 %v2625_v16, 0.0  ;;  %v1278_v31 = vmax.f32 %v2629_v6, 0.0 }
 0x1c6   :  { %1318 = vst [vmem:[%s2976_s5 + $0x90] sm:$0xff] %v1254_v5  ;;  %1319 = vst [vmem:[%s2976_s5 + $0x98] sm:$0xff] %v1255_v48  ;;  %v1279_v42 = vmax.f32 %v2633_v54, 0.0  ;;  %v1280_v63 = vmax.f32 %v2637_v53, 0.0  ;;  %v1281_v34 = vmax.f32 %v2641_v59, 0.0  ;;  %v3086_v10 = vld [vmem:[#allocation12_spill] sm:$0xff] }
 0x1c7   :  { %1320 = vst [vmem:[%s2976_s5 + $0xa0] sm:$0xff] %v1256_v13  ;;  %1321 = vst [vmem:[%s2976_s5 + $0xa8] sm:$0xff] %v1257_v9  ;;  %v1282_v38 = vmax.f32 %v3086_v10, 0.0  ;;  %v3087_v50 = vld [vmem:[#allocation15_spill] sm:$0xff]  ;;  %v3088_v47 = vld [vmem:[#allocation17_spill] sm:$0xff]  ;;  %v1288_v39 = vmax.f32 %v2669_v52, 0.0 }
 0x1c8   :  { %1322 = vst [vmem:[%s2976_s5 + $0xb0] sm:$0xff] %v1258_v41  ;;  %1323 = vst [vmem:[%s2976_s5 + $0xb8] sm:$0xff] %v1259_v46  ;;  %v1283_v23 = vmax.f32 %v3087_v50, 0.0  ;;  %v1284_v22 = vmax.f32 %v3088_v47, 0.0  ;;  %v3089_v16 = vld [vmem:[#allocation14_spill] sm:$0xff]  ;;  %v3090_v54 = vld [vmem:[#allocation16_spill] sm:$0xff] }
 0x1c9   :  { %1324 = vst [vmem:[%s2976_s5 + $0xc0] sm:$0xff] %v1260_v40  ;;  %1325 = vst [vmem:[%s2976_s5 + $0xc8] sm:$0xff] %v1261_v43  ;;  %v1285_v6 = vmax.f32 %v3089_v16, 0.0  ;;  %v1286_v53 = vmax.f32 %v3090_v54, 0.0  ;;  %v3091_v59 = vld [vmem:[#allocation19_spill] sm:$0xff]  ;;  %v1289_v14 = vmax.f32 %v2673_v0, 0.0 }
 0x1ca   :  { %1326 = vst [vmem:[%s2976_s5 + $0xd0] sm:$0xff] %v1262_v61  ;;  %1327 = vst [vmem:[%s2976_s5 + $0xd8] sm:$0xff] %v1263_v7  ;;  %v1287_v60 = vmax.f32 %v3091_v59, 0.0  ;;  %v1290_v3 = vmax.f32 %v2677_v8, 0.0  ;;  %v1291_v26 = vmax.f32 %v2681_v2, 0.0  ;;  %v1292_v52 = vmax.f32 %v2685_v30, 0.0 }
 0x1cb   :  { %1328 = vst [vmem:[%s2976_s5 + $0xe0] sm:$0xff] %v1264_v55  ;;  %1329 = vst [vmem:[%s2976_s5 + $0xe8] sm:$0xff] %v1265_v1  ;;  %v1293_v0 = vmax.f32 %v2689_v32, 0.0  ;;  %v3092_v8 = vld [vmem:[#allocation22_spill] sm:$0xff]  ;;  %v3094_v30 = vld [vmem:[#allocation20_spill] sm:$0xff]  ;;  %v1299_v28 = vmax.f32 %v2713_v37, 0.0 }
 0x1cc   :  { %1330 = vst [vmem:[%s2976_s5 + $0xf0] sm:$0xff] %v1266_v25  ;;  %1331 = vst [vmem:[%s2976_s5 + $0xf8] sm:$0xff] %v1267_v35  ;;  %v1294_v2 = vmax.f32 %v3092_v8, 0.0  ;;  %v3093_v56 = vld [vmem:[#allocation18_spill] sm:$0xff]  ;;  %v1296_v32 = vmax.f32 %v3094_v30, 0.0  ;;  %v3095_v27 = vld [vmem:[#allocation21_spill] sm:$0xff] }
 0x1cd   :  { %1332 = vst [vmem:[%s2976_s5 + $0x100] sm:$0xff] %v1268_v19  ;;  %1333 = vst [vmem:[%s2976_s5 + $0x108] sm:$0xff] %v1269_v29  ;;  %v1295_v57 = vmax.f32 %v3093_v56, 0.0  ;;  %v1297_v15 = vmax.f32 %v3095_v27, 0.0  ;;  %v3096_v21 = vld [vmem:[#allocation23_spill] sm:$0xff] }
 0x1ce   :  { %1334 = vst [vmem:[%s2976_s5 + $0x110] sm:$0xff] %v1270_v62  ;;  %1335 = vst [vmem:[%s2976_s5 + $0x118] sm:$0xff] %v1271_v12  ;;  %v1298_v17 = vmax.f32 %v3096_v21, 0.0 }
 0x1cf   :  { %1336 = vst [vmem:[%s2976_s5 + $0x120] sm:$0xff] %v1272_v45  ;;  %1337 = vst [vmem:[%s2976_s5 + $0x128] sm:$0xff] %v1273_v18 }
 0x1d0   :  { %1338 = vst [vmem:[%s2976_s5 + $0x130] sm:$0xff] %v1274_v24  ;;  %1339 = vst [vmem:[%s2976_s5 + $0x138] sm:$0xff] %v1275_v51 }
 0x1d1   :  { %1340 = vst [vmem:[%s2976_s5 + $0x140] sm:$0xff] %v1276_v58  ;;  %1341 = vst [vmem:[%s2976_s5 + $0x148] sm:$0xff] %v1277_v49 }
 0x1d2   :  { %1342 = vst [vmem:[%s2976_s5 + $0x150] sm:$0xff] %v1278_v31  ;;  %1343 = vst [vmem:[%s2976_s5 + $0x158] sm:$0xff] %v1279_v42 }
 0x1d3   :  { %1344 = vst [vmem:[%s2976_s5 + $0x160] sm:$0xff] %v1280_v63  ;;  %1345 = vst [vmem:[%s2976_s5 + $0x168] sm:$0xff] %v1281_v34 }
 0x1d4   :  { %1346 = vst [vmem:[%s2976_s5 + $0x170] sm:$0xff] %v1282_v38  ;;  %1347 = vst [vmem:[%s2976_s5 + $0x178] sm:$0xff] %v1283_v23 }
 0x1d5   :  { %1348 = vst [vmem:[%s2976_s5 + $0x180] sm:$0xff] %v1284_v22  ;;  %1349 = vst [vmem:[%s2976_s5 + $0x188] sm:$0xff] %v1285_v6 }
 0x1d6   :  { %1350 = vst [vmem:[%s2976_s5 + $0x190] sm:$0xff] %v1286_v53  ;;  %1351 = vst [vmem:[%s2976_s5 + $0x198] sm:$0xff] %v1287_v60 }
 0x1d7   :  { %1352 = vst [vmem:[%s2976_s5 + $0x1a0] sm:$0xff] %v1288_v39  ;;  %1353 = vst [vmem:[%s2976_s5 + $0x1a8] sm:$0xff] %v1289_v14 }
 0x1d8   :  { %1354 = vst [vmem:[%s2976_s5 + $0x1b0] sm:$0xff] %v1290_v3  ;;  %1355 = vst [vmem:[%s2976_s5 + $0x1b8] sm:$0xff] %v1291_v26 }
 0x1d9   :  { %1356 = vst [vmem:[%s2976_s5 + $0x1c0] sm:$0xff] %v1292_v52  ;;  %1357 = vst [vmem:[%s2976_s5 + $0x1c8] sm:$0xff] %v1293_v0 }
 0x1da   :  { %1358 = vst [vmem:[%s2976_s5 + $0x1d0] sm:$0xff] %v1294_v2  ;;  %1359 = vst [vmem:[%s2976_s5 + $0x1d8] sm:$0xff] %v1295_v57 }
 0x1db   :  { %1360 = vst [vmem:[%s2976_s5 + $0x1e0] sm:$0xff] %v1296_v32  ;;  %1361 = vst [vmem:[%s2976_s5 + $0x1e8] sm:$0xff] %v1297_v15 }
 0x1dc   :  { %1362 = vst [vmem:[%s2976_s5 + $0x1f0] sm:$0xff] %v1298_v17  ;;  %1363 = vst [vmem:[%s2976_s5 + $0x1f8] sm:$0xff] %v1299_v28 }

</bundles_post_ra>
